<compile_context>
chip_gen: v6e
topology: v6e:2x2x1
jax: 0.10.0
libtpu: 0.0.40
codegen_flags: <defaults>
</compile_context>

<pallas_src>
import math

import jax
import jax.numpy as jnp
from jax.experimental import pallas as pl
from jax.experimental.pallas import tpu as pltpu


def _round_up(a: int, b: int) -> int:
    return (a + b - 1) // b * b


def _erf(x):
    # Exact-GELU needs erf(). Implement it with guaranteed-lowerable elementwise ops
    # (mul/add/exp/where) via the Numerical Recipes erfc approximation
    # (max abs error ~1.2e-7), preserving nn.GELU()'s default erf-based semantics.
    a = jnp.abs(x)
    t = 1.0 / (1.0 + 0.5 * a)
    poly = -1.26551223 + t * (1.00002368 + t * (0.37409196 + t * (0.09678418
           + t * (-0.18628806 + t * (0.27886807 + t * (-1.13520398
           + t * (1.48851587 + t * (-0.82215223 + t * 0.17087277))))))))
    erfc_a = t * jnp.exp(-a * a + poly)
    return jnp.where(x >= 0, 1.0 - erfc_a, erfc_a - 1.0)


def _gelu_exact(x):
    return 0.5 * x * (1.0 + _erf(x * 0.7071067811865476))


def _mlp_kernel(x_ref, w1_ref, b1_ref, w2_ref, b2_ref, o_ref):
    # x_ref: (tm, C)  w1_ref: (C, Hf)  b1_ref: (1, Hf)  w2_ref: (Hf, Of)  b2_ref: (1, Of)
    x = x_ref[...]
    # fc1 on the MXU, f32 accumulation, bias add in f32
    h = jnp.dot(x, w1_ref[...], preferred_element_type=jnp.float32) + b1_ref[...]
    h = _gelu_exact(h)                                   # exact (erf) GELU
    # fc2 on the MXU (cast back to the storage dtype for the second matmul input)
    y = jnp.dot(h.astype(w2_ref.dtype), w2_ref[...],
                preferred_element_type=jnp.float32) + b2_ref[...]
    o_ref[...] = y.astype(o_ref.dtype)


def mlp_forward(x, w1, b1, w2, b2, *, tm=256):
    """Fused Mlp forward: fc1 -> GELU -> fc2 (dropout p=0 is identity).

    x : (..., C) ;  w1 : (Hf, C), b1 : (Hf,), w2 : (Of, Hf), b2 : (Of,)  (PyTorch layouts).
    """
    orig_shape = x.shape
    C = int(orig_shape[-1])
    Hf, C1 = w1.shape
    Of, Hf2 = w2.shape
    assert C1 == C and Hf2 == Hf

    M = 1
    for d in orig_shape[:-1]:
        M *= int(d)
    xm = x.reshape(M, C)

    # Row tile: multiple of the sublane count (8 for 4-byte, 16 for 2-byte dtypes)
    # so the (8, 128) block constraint holds; pad M up to a tile multiple.
    row_align = 8 if jnp.dtype(x.dtype).itemsize == 4 else 16
    tm = max(row_align, min(int(tm), _round_up(M, row_align)))
    tm = _round_up(tm, row_align)
    Mp = _round_up(M, tm)
    if Mp != M:
        xm = jnp.pad(xm, ((0, Mp - M), (0, 0)))

    # Pre-transpose / pre-cast parameters in the wrapper (no per-step casts in-kernel).
    w1t = w1.T.astype(x.dtype)                      # (C, Hf)
    w2t = w2.T.astype(x.dtype)                      # (Hf, Of)
    b1r = b1.reshape(1, Hf).astype(jnp.float32)     # (1, Hf)
    b2r = b2.reshape(1, Of).astype(jnp.float32)     # (1, Of)

    grid = (Mp // tm,)
    out = pl.pallas_call(
        _mlp_kernel,
        out_shape=jax.ShapeDtypeStruct((Mp, Of), x.dtype),
        grid_spec=pltpu.PrefetchScalarGridSpec(
            num_scalar_prefetch=0,
            grid=grid,
            in_specs=[
                pl.BlockSpec((tm, C), lambda i: (i, 0)),   # activations: tiled over tokens
                pl.BlockSpec((C, Hf), lambda i: (0, 0)),   # fc1 weight: resident
                pl.BlockSpec((1, Hf), lambda i: (0, 0)),   # fc1 bias:   resident
                pl.BlockSpec((Hf, Of), lambda i: (0, 0)),  # fc2 weight: resident
                pl.BlockSpec((1, Of), lambda i: (0, 0)),   # fc2 bias:   resident
            ],
            out_specs=pl.BlockSpec((tm, Of), lambda i: (i, 0)),
        ),
        compiler_params=pltpu.CompilerParams(
            dimension_semantics=("parallel",),          # shard token tiles across TCs (v7x)
            vmem_limit_bytes=32 * 1024 * 1024,          # explicit, safe on v5e/v6e/v7x
        ),
    )(xm, w1t, b1r, w2t, b2r)

    if Mp != M:
        out = out[:M]
    return out.reshape(*orig_shape[:-1], Of)


def _reference(x, w1, b1, w2, b2):
    """Pure-JAX reference mirroring the PyTorch forward (dropout p=0 => identity)."""
    h = jnp.einsum("blc,hc->blh", x, w1, preferred_element_type=jnp.float32) + b1
    h = jax.nn.gelu(h, approximate=False)   # exact erf GELU == nn.GELU() default
    return jnp.einsum("blh,oh->blo", h, w2, preferred_element_type=jnp.float32) + b2


if __name__ == "__main__":
    # Small shapes consistent with the module: 2 x 64 tokens, in_features=128,
    # hidden_features=256, out_features=128 (lane-dense 128-multiple channel dims).
    B, L, C, Hf = 2, 64, 128, 256
    Of = C
    key = jax.random.PRNGKey(0)
    kx, kw1, kb1, kw2, kb2 = jax.random.split(key, 5)

    x = jax.random.normal(kx, (B, L, C), dtype=jnp.float32)
    w1 = jax.random.normal(kw1, (Hf, C), dtype=jnp.float32) / math.sqrt(C)
    b1 = 0.1 * jax.random.normal(kb1, (Hf,), dtype=jnp.float32)
    w2 = jax.random.normal(kw2, (Of, Hf), dtype=jnp.float32) / math.sqrt(Hf)
    b2 = 0.1 * jax.random.normal(kb2, (Of,), dtype=jnp.float32)

    # tm=64 -> grid of 2 token tiles (exercises pipelining / dual-TC sharding path).
    out = mlp_forward(x, w1, b1, w2, b2, tm=64)
    out = jax.block_until_ready(out)

    ref = _reference(x, w1, b1, w2, b2)
    assert out.shape == (B, L, Of), out.shape
    max_err = float(jnp.abs(out - ref).max())
    assert jnp.allclose(out, ref, atol=1e-3, rtol=1e-3), max_err

    print("KERNEL_OK")
</pallas_src>

<mosaic_0001>
module attributes {stable_mosaic.version = 11 : i64} {
  func.func @_mlp_kernel(%arg0: i32, %arg1: memref<64x128xf32, #tpu.memory_space<vmem>>, %arg2: memref<128x256xf32, #tpu.memory_space<vmem>>, %arg3: memref<1x256xf32, #tpu.memory_space<vmem>>, %arg4: memref<256x128xf32, #tpu.memory_space<vmem>>, %arg5: memref<1x128xf32, #tpu.memory_space<vmem>>, %arg6: memref<64x128xf32, #tpu.memory_space<vmem>>) attributes {dimension_semantics = [#tpu.dimension_semantics<parallel>], iteration_bounds = array<i64: 2>, scalar_prefetch = 0 : i64, scratch_operands = 0 : i64, tpu.core_type = #tpu.core_type<tc>, window_params = [{transform_indices = @transform_0, window_bounds = array<i64: 64, 128>}, {pipeline_mode = #tpu.pipeline_mode<synchronous>, transform_indices = @transform_1, window_bounds = array<i64: 128, 256>}, {pipeline_mode = #tpu.pipeline_mode<synchronous>, transform_indices = @transform_2, window_bounds = array<i64: 1, 256>}, {pipeline_mode = #tpu.pipeline_mode<synchronous>, transform_indices = @transform_3, window_bounds = array<i64: 256, 128>}, {pipeline_mode = #tpu.pipeline_mode<synchronous>, transform_indices = @transform_4, window_bounds = array<i64: 1, 128>}, {transform_indices = @transform_5, window_bounds = array<i64: 64, 128>}]} {
    %c0 = arith.constant 0 : index
    %c0_0 = arith.constant 0 : index
    %0 = vector.load %arg1[%c0, %c0_0] : memref<64x128xf32, #tpu.memory_space<vmem>>, vector<64x128xf32>
    %c0_1 = arith.constant 0 : index
    %c0_2 = arith.constant 0 : index
    %1 = vector.load %arg2[%c0_1, %c0_2] : memref<128x256xf32, #tpu.memory_space<vmem>>, vector<128x256xf32>
    %cst = arith.constant dense<0.000000e+00> : vector<64x256xf32>
    %2 = tpu.matmul %0, %1, %cst {dimension_numbers = #tpu.dot_dimension_numbers<[1], [0], [0], [1], [0, 0, 1, 1], [], []>} : vector<64x128xf32>, vector<128x256xf32>, vector<64x256xf32> -> vector<64x256xf32>
    %c0_3 = arith.constant 0 : index
    %c0_4 = arith.constant 0 : index
    %3 = vector.load %arg3[%c0_3, %c0_4] : memref<1x256xf32, #tpu.memory_space<vmem>>, vector<1x256xf32>
    %4 = vector.broadcast %3 : vector<1x256xf32> to vector<64x256xf32>
    %5 = arith.addf %2, %4 : vector<64x256xf32>
    %cst_5 = arith.constant 5.000000e-01 : f32
    %6 = vector.broadcast %cst_5 : f32 to vector<64x256xf32>
    %7 = arith.mulf %6, %5 : vector<64x256xf32>
    %cst_6 = arith.constant 0.707106769 : f32
    %8 = vector.broadcast %cst_6 : f32 to vector<64x256xf32>
    %9 = arith.mulf %5, %8 : vector<64x256xf32>
    %10 = math.absf %9 : vector<64x256xf32>
    %cst_7 = arith.constant 5.000000e-01 : f32
    %11 = vector.broadcast %cst_7 : f32 to vector<64x256xf32>
    %12 = arith.mulf %11, %10 : vector<64x256xf32>
    %cst_8 = arith.constant 1.000000e+00 : f32
    %13 = vector.broadcast %cst_8 : f32 to vector<64x256xf32>
    %14 = arith.addf %13, %12 : vector<64x256xf32>
    %cst_9 = arith.constant 1.000000e+00 : f32
    %15 = vector.broadcast %cst_9 : f32 to vector<64x256xf32>
    %16 = arith.divf %15, %14 : vector<64x256xf32>
    %cst_10 = arith.constant 0.170872763 : f32
    %17 = vector.broadcast %cst_10 : f32 to vector<64x256xf32>
    %18 = arith.mulf %16, %17 : vector<64x256xf32>
    %cst_11 = arith.constant -0.822152256 : f32
    %19 = vector.broadcast %cst_11 : f32 to vector<64x256xf32>
    %20 = arith.addf %19, %18 : vector<64x256xf32>
    %21 = arith.mulf %16, %20 : vector<64x256xf32>
    %cst_12 = arith.constant 1.48851585 : f32
    %22 = vector.broadcast %cst_12 : f32 to vector<64x256xf32>
    %23 = arith.addf %22, %21 : vector<64x256xf32>
    %24 = arith.mulf %16, %23 : vector<64x256xf32>
    %cst_13 = arith.constant -1.13520396 : f32
    %25 = vector.broadcast %cst_13 : f32 to vector<64x256xf32>
    %26 = arith.addf %25, %24 : vector<64x256xf32>
    %27 = arith.mulf %16, %26 : vector<64x256xf32>
    %cst_14 = arith.constant 0.278868079 : f32
    %28 = vector.broadcast %cst_14 : f32 to vector<64x256xf32>
    %29 = arith.addf %28, %27 : vector<64x256xf32>
    %30 = arith.mulf %16, %29 : vector<64x256xf32>
    %cst_15 = arith.constant -0.186288059 : f32
    %31 = vector.broadcast %cst_15 : f32 to vector<64x256xf32>
    %32 = arith.addf %31, %30 : vector<64x256xf32>
    %33 = arith.mulf %16, %32 : vector<64x256xf32>
    %cst_16 = arith.constant 0.0967841818 : f32
    %34 = vector.broadcast %cst_16 : f32 to vector<64x256xf32>
    %35 = arith.addf %34, %33 : vector<64x256xf32>
    %36 = arith.mulf %16, %35 : vector<64x256xf32>
    %cst_17 = arith.constant 0.374091953 : f32
    %37 = vector.broadcast %cst_17 : f32 to vector<64x256xf32>
    %38 = arith.addf %37, %36 : vector<64x256xf32>
    %39 = arith.mulf %16, %38 : vector<64x256xf32>
    %cst_18 = arith.constant 1.00002372 : f32
    %40 = vector.broadcast %cst_18 : f32 to vector<64x256xf32>
    %41 = arith.addf %40, %39 : vector<64x256xf32>
    %42 = arith.mulf %16, %41 : vector<64x256xf32>
    %cst_19 = arith.constant -1.26551223 : f32
    %43 = vector.broadcast %cst_19 : f32 to vector<64x256xf32>
    %44 = arith.addf %43, %42 : vector<64x256xf32>
    %cst_20 = arith.constant 0.000000e+00 : f32
    %45 = vector.broadcast %cst_20 : f32 to vector<64x256xf32>
    %46 = arith.subf %45, %10 : vector<64x256xf32>
    %47 = arith.mulf %46, %10 : vector<64x256xf32>
    %48 = arith.addf %47, %44 : vector<64x256xf32>
    %49 = math.exp %48 : vector<64x256xf32>
    %50 = arith.mulf %16, %49 : vector<64x256xf32>
    %cst_21 = arith.constant 0.000000e+00 : f32
    %51 = vector.broadcast %cst_21 : f32 to vector<64x256xf32>
    %52 = arith.cmpf oge, %9, %51 : vector<64x256xf32>
    %cst_22 = arith.constant 1.000000e+00 : f32
    %53 = vector.broadcast %cst_22 : f32 to vector<64x256xf32>
    %54 = arith.subf %53, %50 : vector<64x256xf32>
    %cst_23 = arith.constant 1.000000e+00 : f32
    %55 = vector.broadcast %cst_23 : f32 to vector<64x256xf32>
    %56 = arith.subf %50, %55 : vector<64x256xf32>
    %57 = arith.select %52, %54, %56 : vector<64x256xi1>, vector<64x256xf32>
    %cst_24 = arith.constant 1.000000e+00 : f32
    %58 = vector.broadcast %cst_24 : f32 to vector<64x256xf32>
    %59 = arith.addf %58, %57 : vector<64x256xf32>
    %60 = arith.mulf %7, %59 : vector<64x256xf32>
    %c0_25 = arith.constant 0 : index
    %c0_26 = arith.constant 0 : index
    %61 = vector.load %arg4[%c0_25, %c0_26] : memref<256x128xf32, #tpu.memory_space<vmem>>, vector<256x128xf32>
    %cst_27 = arith.constant dense<0.000000e+00> : vector<64x128xf32>
    %62 = tpu.matmul %60, %61, %cst_27 {dimension_numbers = #tpu.dot_dimension_numbers<[1], [0], [0], [1], [0, 0, 1, 1], [], []>} : vector<64x256xf32>, vector<256x128xf32>, vector<64x128xf32> -> vector<64x128xf32>
    %c0_28 = arith.constant 0 : index
    %c0_29 = arith.constant 0 : index
    %63 = vector.load %arg5[%c0_28, %c0_29] : memref<1x128xf32, #tpu.memory_space<vmem>>, vector<1x128xf32>
    %64 = vector.broadcast %63 : vector<1x128xf32> to vector<64x128xf32>
    %65 = arith.addf %62, %64 : vector<64x128xf32>
    %c0_30 = arith.constant 0 : index
    %c0_31 = arith.constant 0 : index
    %66 = vector.load %arg6[%c0_30, %c0_31] : memref<64x128xf32, #tpu.memory_space<vmem>>, vector<64x128xf32>
    tpu.vector_store %arg6[%c0_30, %c0_31], %65 {strides = array<i32>} : memref<64x128xf32, #tpu.memory_space<vmem>>, vector<64x128xf32>,
    return
  }
  func.func @transform_0(%arg0: i32) -> (i32, i32) {
    %c0_i32 = arith.constant 0 : i32
    %c0_i32_0 = arith.constant 0 : i32
    return %arg0, %c0_i32 : i32, i32
  }
  func.func @transform_1(%arg0: i32) -> (i32, i32) {
    %c0_i32 = arith.constant 0 : i32
    %c0_i32_0 = arith.constant 0 : i32
    %c0_i32_1 = arith.constant 0 : i32
    return %c0_i32, %c0_i32_0 : i32, i32
  }
  func.func @transform_2(%arg0: i32) -> (i32, i32) {
    %c0_i32 = arith.constant 0 : i32
    %c0_i32_0 = arith.constant 0 : i32
    %c0_i32_1 = arith.constant 0 : i32
    return %c0_i32, %c0_i32_0 : i32, i32
  }
  func.func @transform_3(%arg0: i32) -> (i32, i32) {
    %c0_i32 = arith.constant 0 : i32
    %c0_i32_0 = arith.constant 0 : i32
    %c0_i32_1 = arith.constant 0 : i32
    return %c0_i32, %c0_i32_0 : i32, i32
  }
  func.func @transform_4(%arg0: i32) -> (i32, i32) {
    %c0_i32 = arith.constant 0 : i32
    %c0_i32_0 = arith.constant 0 : i32
    %c0_i32_1 = arith.constant 0 : i32
    return %c0_i32, %c0_i32_0 : i32, i32
  }
  func.func @transform_5(%arg0: i32) -> (i32, i32) {
    %c0_i32 = arith.constant 0 : i32
    %c0_i32_0 = arith.constant 0 : i32
    return %arg0, %c0_i32 : i32, i32
  }
}

</mosaic_0001>

<bundles_post_ra>
// kernel: tpu_custom_call.1
= control target key start
LH: loop header
LB: loop body
LE: loop exit
PB: predicated region body
PF: predicated region fallthrough
CT: control target
= control target key end

     0   :  { %10 = vsyncpa [#allocation3], 0  ;;  %s2468_s0 = inlined_call_operand.hbm [shape: f32[128,128], index: 0, kind: input, shape index: {}]   ;;  %s2469_s1 = inlined_call_operand.hbm [shape: f32[128,256], index: 1, kind: input, shape index: {}]   ;;  %s2470_s2 = inlined_call_operand.vmem [shape: f32[1,256], index: 2, kind: input, shape index: {}]   ;;  %s2471_s3 = inlined_call_operand.hbm [shape: f32[256,128], index: 3, kind: input, shape index: {}]   ;;  %s2472_s4 = inlined_call_operand.vmem [shape: f32[1,128], index: 4, kind: input, shape index: {}]   ;;  %s2473_s5 = inlined_call_operand.hbm [shape: f32[128,128], index: 5, kind: output, shape index: {}]  }
   0x1   :  { %12 = vsyncpa [#allocation3 + $0x1], 0 }
   0x2   :  { %13 = vsyncpa [#allocation6], 0 }
   0x3   :  { %14 = vsyncpa [#allocation4], 0 }
   0x4   :  { %16 = vsyncpa [#allocation4 + $0x1], 0  ;;  %s1711_s18 = smov 0   ;;  %s1713_s19 = smov 0  }
   0x5   :  { %s1715_s20 = smov 0   ;;  %s1717_s21 = smov 0  }
   0x6 LB: > { %s1732_s22 = sadd.s32 4294967295, %s1668_s21   ;;  %s1289_s23 = sadd.s32 4294967294, %s1668_s21   ;;  %s1668_s21 = sphi %s1717_s21, %s2527_s21   ;;  %s1664_s20 = sphi %s1715_s20, %s2526_s20   ;;  %s1660_s19 = sphi %s1713_s19, %s2525_s19   ;;  %s1656_s18 = sphi %s1711_s18, %s2524_s18  }
   0x7   : > { %p42_p0 = scmp.ne.s32.totalorder %s1660_s19, %s1656_s18  ;;  %p2474_p1 = scmp.eq.s32.totalorder %s1732_s22, 0 }
   0x8   : > { %p156_p3 = scmp.eq.s32.totalorder %s1289_s23, 1  ;;  %p1290_p5 = scmp.ge.s32.totalorder %s1668_s21, 1 }
   0x9   : > { %p1741_p4 = por %p2474_p1, %p42_p0  ;;  %p163_p7 = scmp.lt.s32.totalorder %s1668_s21, 3 }
   0xa   : > { %p1746_p6 = por %p156_p3, %p42_p0  ;;  %s1670_s27 = smov [#allocation5]  }
   0xb   : > { %s2487_s24 = scalar_select %p1741_p4, 1, 0 }
   0xc   : > { %s2488_s25 = scalar_select %p1746_p6, 1, 0 }
   0xd   : > { %p1751_p8 = pnand %p1290_p5, %p163_p7  ;;  %s175_s28 = sshll.u32 %s1670_s27, 4  ;;  %s176_s28 = int_to_ptr.vmem [resolvable:$true] %s175_s28 }
   0xe   : > { %s1671_s30 = smov [#allocation7]   ;;  %s1531_s7 = scalar_lea.vmem %s176_s28, 4096 }
   0xf   : > { %s2489_s26 = scalar_select %p1751_p8, 1, 0 }
  0x10   : > { %p1394_p9 = pneg %p1751_p8  ;;  %s191_s6 = sshll.u32 %s1671_s30, 4  ;;  %s192_s6 = int_to_ptr.vmem [resolvable:$true] %s191_s6 }
  0x11   : > { %p1532_p13 = scmp.ne.s32.totalorder %s176_s28, %s1531_s7  ;;  %p1539_p5 = scmp.lt.s32.totalorder %s176_s28, %s176_s28 }
  0x12   : > { %p1760_p11 = pnand %p1394_p9, %p2474_p1  ;;  %p1540_p7 = scmp.lt.s32.totalorder %s1531_s7, %s1531_s7 }
  0x14   : > { %p1522_p12 = pneg %p1760_p11  ;;  %p1541_p10 = por %p1540_p7, %p1539_p5 }
  0x16   : > { %p1534_p0 = pnand %p1532_p13, %p1522_p12 }
  0x18   : > { %p1535_p3 = pneg %p1534_p0 }
  0x1a   : > { %p1542_p9 = pnand %p1541_p10, %p1535_p3 }
  0x1c   : > { %1545 = shalt.err (!%p1542_p9)
}
  0x1d   : > { %s1672_s8 = smov 256   ;;  %s1673_s9 = smov 16  }
  0x1e   : > { %1397 = dma.hbm_to_vmem [thread:$0]  (!%p1760_p11), %s2469_s1, 4096, %s176_s28, [#allocation6], %s1672_s8, %s1672_s8, %s1673_s9  }
  0x1f   : > { %s1557_s12 = scalar_lea.vmem %s192_s6, 4096  ;;  %p1565_p2 = scmp.lt.s32.totalorder %s192_s6, %s192_s6 }
  0x20   : > { %p1558_p1 = scmp.ne.s32.totalorder %s192_s6, %s1557_s12  ;;  %p1566_p6 = scmp.lt.s32.totalorder %s1557_s12, %s1557_s12 }
  0x22   : > { %p1560_p13 = pnand %p1558_p1, %p1522_p12  ;;  %p1567_p5 = por %p1566_p6, %p1565_p2 }
  0x24   : > { %p1561_p0 = pneg %p1560_p13 }
  0x26   : > { %p1568_p10 = pnand %p1567_p5, %p1561_p0 }
  0x28   : > { %1571 = shalt.err (!%p1568_p10)
}
  0x29   : > { %s2475_s13 = smov 128   ;;  %s1675_s14 = smov 8  }
  0x2a   : > { %1400 = dma.hbm_to_vmem [thread:$0]  (!%p1760_p11), %s2471_s3, 4096, %s192_s6, [#allocation6], %s2475_s13, %s2475_s13, %s1675_s14  }
  0x2b   : > { %s1786_s17 = sadd.s32 1, %s1668_s21   ;;  %s29_s27 = sadd.s32 1, %s1664_s20 }
  0x2c   : > { %s26_s23 = ssub.s32 %s1668_s21, %s1786_s17  ;;  %p36_p2 = scmp.ne.s32.totalorder %s1664_s20, %s1660_s19 }
  0x2d   : > { %p27_p1 = scmp.eq.s32.totalorder %s26_s23, 0  ;;  %p37_p6 = scmp.eq.s32.totalorder %s1668_s21, 0 }
  0x2e   : > { %p2491_p3 = scmp.eq.s32.totalorder %s1732_s22, 1  ;;  %p1411_p9 = scmp.lt.s32.totalorder %s1668_s21, 2 }
  0x2f   : > { %s1795_s28 = scalar_select %p27_p1, %s1664_s20, %s29_s27  }
  0x30   : > { %p38_p12 = por %p37_p6, %p36_p2  ;;  %p1799_p7 = por %p2491_p3, %p36_p2 }
  0x31   : > { %s208_s30 = sand.u32 1, %s1664_s20   ;;  %s1324_s6 = sshll.u32 %s1668_s21, 10 }
  0x32   : > { %s2492_s29 = scalar_select %p1799_p7, 1, 0 }
  0x33   : > { %s1294_s7 = sshll.u32 %s208_s30, 6  ;;  %s1809_s10 = scalar_lea.hbm %s2468_s0, %s1324_s6 }
  0x34   : > { %s212_s11 = scalar_lea.vmem [#allocation2], %s1294_s7  ;;  %p1813_p11 = pnand %p1411_p9, %p38_p12 }
  0x35   : > { %s219_s12 = sshll.u32 %s212_s11, 4  ;;  %s1817_s16 = scalar_lea.sflag [#allocation3], %s208_s30  ;;  %s1811_s12 = int_to_ptr.vmem [resolvable:$true] %s219_s12 }
  0x36   : > { %s1572_s23 = scalar_lea.hbm %s1809_s10, 1024  ;;  %p1574_p0 = pneg %p1813_p11 }
  0x37   : > { %p1573_p13 = scmp.ne.s32.totalorder %s1809_s10, %s1572_s23  ;;  %s1577_s7 = scalar_lea.hbm %s2468_s0, 2048 }
  0x38   : > { %p1578_p1 = scmp.lt.s32.totalorder %s1809_s10, %s2468_s0  ;;  %p1579_p2 = scmp.lt.s32.totalorder %s1577_s7, %s1572_s23 }
  0x39   : > { %p1575_p5 = pnand %p1574_p0, %p1573_p13 }
  0x3a   : > { %p1580_p6 = por %p1579_p2, %p1578_p1 }
  0x3b   : > { %p1576_p10 = pneg %p1575_p5 }
  0x3d   : > { %p1581_p12 = pnand %p1580_p6, %p1576_p10 }
  0x3f   : > { %1584 = shalt.err (!%p1581_p12)
}
  0x40   : > { %s1585_s30 = scalar_lea.vmem %s1811_s12, 1024  ;;  %s1676_s11 = smov [#allocation2]  }
  0x41   : > { %p1586_p3 = scmp.ne.s32.totalorder %s1811_s12, %s1585_s30  ;;  %s1590_s13 = sshll.u32 %s1676_s11, 4  ;;  %s1591_s13 = int_to_ptr.vmem [resolvable:$false] %s1590_s13 }
  0x42   : > { %s1592_s27 = scalar_lea.vmem %s1591_s13, 2048  ;;  %p1593_p5 = scmp.lt.s32.totalorder %s1811_s12, %s1591_s13 }
  0x43   : > { %p1588_p9 = pnand %p1586_p3, %p1574_p0  ;;  %p1594_p7 = scmp.lt.s32.totalorder %s1592_s27, %s1585_s30 }
  0x45   : > { %p1589_p13 = pneg %p1588_p9  ;;  %p1595_p4 = por %p1594_p7, %p1593_p5 }
  0x47   : > { %p1596_p8 = pnand %p1595_p4, %p1589_p13 }
  0x49   : > { %1599 = shalt.err (!%p1596_p8)
}
  0x4a   : > { %s2494_s23 = smov 128   ;;  %p2495_p0 = scmp.ne.s32.totalorder %s2489_s26, 0 }
  0x4b   : > { %1404 = dma.hbm_to_vmem [thread:$0]  (!%p1813_p11), %s1809_s10, 1024, %s1811_s12, %s1817_s16, %s2494_s23, %s2494_s23, %s1675_s14  }
  0x4c   : > { %231 = sbr.rel (%p2495_p0) target bundleno = 707 (0x2c3), region = 40 }
  0x51   : > { %s1844_s6 = sand.u32 1, %s1660_s19   ;;  %p2496_p4 = scmp.ne.s32.totalorder %s2487_s24, 0 }
  0x52   : > { %s1298_s13 = sshll.u32 %s1844_s6, 6  ;;  %s234_s7 = scalar_lea.sflag [#allocation3], %s1844_s6 }
  0x53   : > { %s1850_s15 = scalar_lea.vmem [#allocation2], %s1298_s13 }
  0x54   : > { %1643 = dma.done.wait (%p2496_p4), %s234_s7, 1024  }
  0x55   : > { %1645 = vsyncadd (%p2496_p4), %s234_s7, 4294966272  ;;  %p2497_p8 = scmp.eq.s32.totalorder %s1732_s22, 0 }
  0x57   : > { %1647 = dma.done.wait (%p2497_p8), [#allocation6], 8192   ;;  %p2498_p7 = pmov %p2497_p8 }
  0x58   : > { %v1677_v0 = vmov 0.0   ;;  %v313_v1 = vld [vmem:[#allocation5 + $0xf8] sm:$0xff]  ;;  %v312_v2 = vld [vmem:[#allocation5 + $0xf0] sm:$0xff]  ;;  %v311_v3 = vld [vmem:[#allocation5 + $0xe8] sm:$0xff]  ;;  %v316_v41 = vlaneseq  ;;  %s2408_s12 = scalar_lea.vmem [#allocation8], %s1298_s13  ;;  %s1325_s8 = sshll.u32 %s1732_s22, 10 }
  0x59   : > { %1649 = vsyncadd (%p2498_p7), [#allocation6], 4294959104  ;;  %390 = vmatprep.mubr.f32.mxu0 %v1677_v0  ;;  %326 = vmatprep.subr.mxu0 %v313_v1  ;;  %v310_v4 = vld [vmem:[#allocation5 + $0xe0] sm:$0xff]  ;;  %v309_v5 = vld [vmem:[#allocation5 + $0xd8] sm:$0xff]  ;;  %s1197_s16 = sshll.u32 %s2408_s12, 4  ;;  %s2424_s11 = scalar_lea.hbm %s2473_s5, %s1325_s8  ;;  %s2419_s16 = int_to_ptr.vmem [resolvable:$true] %s1197_s16 }
  0x5a   : > { %327 = vmatpush1.msra.mxu0 %v312_v2  ;;  %v308_v6 = vld [vmem:[#allocation5 + $0xd0] sm:$0xff]  ;;  %v307_v7 = vld [vmem:[#allocation5 + $0xc8] sm:$0xff]  ;;  %v306_v8 = vld [vmem:[#allocation5 + $0xc0] sm:$0xff]  ;;  %v317_v42 = vshrl.u32 %v316_v41, 7  ;;  %s1184_s27 = scalar_lea.sflag [#allocation4], %s1844_s6  ;;  %s1600_s23 = scalar_lea.vmem %s2419_s16, 1024 }
  0x5b   : > { %328 = vmatprep.subr.mxu0 %v311_v3  ;;  %v305_v9 = vld [vmem:[#allocation5 + $0xb8] sm:$0xff]  ;;  %v304_v10 = vld [vmem:[#allocation5 + $0xb0] sm:$0xff]  ;;  %v303_v11 = vld [vmem:[#allocation5 + $0xa8] sm:$0xff]  ;;  %p1601_p11 = scmp.ne.s32.totalorder %s2419_s16, %s1600_s23  ;;  %p2521_p10 = scmp.ne.s32.totalorder %s2492_s29, 0 }
  0x5c   : > { %329 = vmatpush1.msra.mxu0 %v310_v4  ;;  %v302_v12 = vld [vmem:[#allocation5 + $0xa0] sm:$0xff]  ;;  %v301_v13 = vld [vmem:[#allocation5 + $0x98] sm:$0xff]  ;;  %v300_v14 = vld [vmem:[#allocation5 + $0x90] sm:$0xff]  ;;  %v318_v43 = vsub.s32 0, %v317_v42  ;;  %v322_v47 = vsub.s32 1, %v317_v42  ;;  %s1678_s22 = smov [#allocation8]  }
  0x5d   : > { %330 = vmatprep.subr.mxu0 %v309_v5  ;;  %v299_v15 = vld [vmem:[#allocation5 + $0x88] sm:$0xff]  ;;  %v298_v16 = vld [vmem:[#allocation5 + $0x80] sm:$0xff]  ;;  %v297_v17 = vld [vmem:[#allocation5 + $0x78] sm:$0xff]  ;;  %p1602_p1 = pnand %p1601_p11, %p2521_p10  ;;  %s1604_s13 = sshll.u32 %s1678_s22, 4  ;;  %s1605_s13 = int_to_ptr.vmem [resolvable:$false] %s1604_s13 }
  0x5e   : > { %331 = vmatpush1.msra.mxu0 %v308_v6  ;;  %v296_v18 = vld [vmem:[#allocation5 + $0x70] sm:$0xff]  ;;  %v295_v19 = vld [vmem:[#allocation5 + $0x68] sm:$0xff]  ;;  %v294_v20 = vld [vmem:[#allocation5 + $0x60] sm:$0xff]  ;;  %s1606_s7 = scalar_lea.vmem %s1605_s13, 2048  ;;  %p1607_p6 = scmp.lt.s32.totalorder %s2419_s16, %s1605_s13 }
  0x5f   : > { %332 = vmatprep.subr.mxu0 %v307_v7  ;;  %v293_v21 = vld [vmem:[#allocation5 + $0x58] sm:$0xff]  ;;  %v292_v22 = vld [vmem:[#allocation5 + $0x50] sm:$0xff]  ;;  %v291_v23 = vld [vmem:[#allocation5 + $0x48] sm:$0xff]  ;;  %p1603_p2 = pneg %p1602_p1  ;;  %p1608_p12 = scmp.lt.s32.totalorder %s1606_s7, %s1600_s23 }
  0x60   : > { %333 = vmatpush1.msra.mxu0 %v306_v8  ;;  %v290_v24 = vld [vmem:[#allocation5 + $0x40] sm:$0xff]  ;;  %v289_v25 = vld [vmem:[#allocation5 + $0x38] sm:$0xff]  ;;  %v288_v26 = vld [vmem:[#allocation5 + $0x30] sm:$0xff] }
  0x61   : > { %334 = vmatprep.subr.mxu0 %v305_v9  ;;  %v287_v27 = vld [vmem:[#allocation5 + $0x28] sm:$0xff]  ;;  %v286_v28 = vld [vmem:[#allocation5 + $0x20] sm:$0xff]  ;;  %v285_v29 = vld [vmem:[#allocation5 + $0x18] sm:$0xff]  ;;  %p1609_p3 = por %p1608_p12, %p1607_p6 }
  0x62   : > { %335 = vmatpush1.msra.mxu0 %v304_v10  ;;  %v284_v30 = vld [vmem:[#allocation5 + $0x10] sm:$0xff]  ;;  %v283_v31 = vld [vmem:[#allocation5 + $0x8] sm:$0xff]  ;;  %v282_v32 = vld [vmem:[#allocation5] sm:$0xff] }
  0x63   : > { %336 = vmatprep.subr.mxu0 %v303_v11  ;;  %v274_v33 = vld [vmem:[%s1850_s15] sm:$0xff]  ;;  %v275_v34 = vld [vmem:[%s1850_s15 + $0x8] sm:$0xff]  ;;  %v276_v35 = vld [vmem:[%s1850_s15 + $0x10] sm:$0xff]  ;;  %p1610_p9 = pnand %p1609_p3, %p1603_p2 }
  0x64   : > { %337 = vmatpush1.msra.mxu0 %v302_v12  ;;  %v277_v36 = vld [vmem:[%s1850_s15 + $0x18] sm:$0xff]  ;;  %v278_v37 = vld [vmem:[%s1850_s15 + $0x20] sm:$0xff]  ;;  %v279_v38 = vld [vmem:[%s1850_s15 + $0x28] sm:$0xff] }
  0x65   : > { %338 = vmatprep.subr.mxu0 %v301_v13  ;;  %v280_v39 = vld [vmem:[%s1850_s15 + $0x30] sm:$0xff]  ;;  %v281_v40 = vld [vmem:[%s1850_s15 + $0x38] sm:$0xff]  ;;  %v314_v45 = vld [vmem:[%s2470_s2] sm:$0x3] }
  0x66   : > { %339 = vmatpush1.msra.mxu0 %v300_v14  ;;  %v1062_v44 = vld [vmem:[#allocation7 + $0xf8] sm:$0xff]  ;;  %v1061_v48 = vld [vmem:[#allocation7 + $0xf0] sm:$0xff]  ;;  %v1879_v50 = vrot.slane %v314_v45, %v318_v43  ;;  %v1060_v51 = vld [vmem:[#allocation7 + $0xe8] sm:$0xff]  ;;  %v1881_v53 = vrot.slane %v314_v45, %v322_v47 }
  0x67   : > { %340 = vmatprep.subr.mxu0 %v299_v15  ;;  %1326 = vmatprep.subr.mxu1 %v1062_v44  ;;  %v1046_v46 = vld [vmem:[#allocation7 + $0x78] sm:$0xff]  ;;  %v1045_v49 = vld [vmem:[#allocation7 + $0x70] sm:$0xff]  ;;  %v1044_v52 = vld [vmem:[#allocation7 + $0x68] sm:$0xff] }
  0x68   : > { %341 = vmatpush1.msra.mxu0 %v298_v16  ;;  %1327 = vmatpush3.msra.mxu1 %v1046_v46  ;;  %v1059_v54 = vld [vmem:[#allocation7 + $0xe0] sm:$0xff]  ;;  %v1058_v58 = vld [vmem:[#allocation7 + $0xd8] sm:$0xff]  ;;  %v1057_v63 = vld [vmem:[#allocation7 + $0xd0] sm:$0xff] }
  0x69   : > { %342 = vmatprep.subr.mxu0 %v297_v17  ;;  %1328 = vmatprep.subr.mxu1 %v1061_v48  ;;  %v1043_v56 = vld [vmem:[#allocation7 + $0x60] sm:$0xff]  ;;  %v1042_v60 = vld [vmem:[#allocation7 + $0x58] sm:$0xff]  ;;  %v1041_v1 = vld [vmem:[#allocation7 + $0x50] sm:$0xff] }
  0x6a   : > { %343 = vmatpush1.msra.mxu0 %v296_v18  ;;  %1329 = vmatpush3.msra.mxu1 %v1045_v49  ;;  %v1056_v5 = vld [vmem:[#allocation7 + $0xc8] sm:$0xff]  ;;  %v1055_v10 = vld [vmem:[#allocation7 + $0xc0] sm:$0xff]  ;;  %v1054_v17 = vld [vmem:[#allocation7 + $0xb8] sm:$0xff] }
  0x6b   : > { %344 = vmatprep.subr.mxu0 %v295_v19  ;;  %1330 = vmatprep.subr.mxu1 %v1060_v51  ;;  %v1040_v7 = vld [vmem:[#allocation7 + $0x48] sm:$0xff]  ;;  %v1039_v14 = vld [vmem:[#allocation7 + $0x40] sm:$0xff]  ;;  %v1050_v45 = vld [vmem:[#allocation7 + $0x98] sm:$0xff] }
  0x6c   : > { %345 = vmatpush1.msra.mxu0 %v294_v20  ;;  %1331 = vmatpush3.msra.mxu1 %v1044_v52  ;;  %v1051_v41 = vld [vmem:[#allocation7 + $0xa0] sm:$0xff]  ;;  %v1034_v48 = vld [vmem:[#allocation7 + $0x18] sm:$0xff]  ;;  %v1049_v52 = vld [vmem:[#allocation7 + $0x90] sm:$0xff] }
  0x6d   : > { %346 = vmatprep.subr.mxu0 %v293_v21  ;;  %1332 = vmatprep.subr.mxu1 %v1059_v54  ;;  %v1035_v42 = vld [vmem:[#allocation7 + $0x20] sm:$0xff] }
  0x6e   : > { %347 = vmatpush1.msra.mxu0 %v292_v22  ;;  %1333 = vmatpush3.msra.mxu1 %v1043_v56 }
  0x6f   : > { %348 = vmatprep.subr.mxu0 %v291_v23  ;;  %1334 = vmatprep.subr.mxu1 %v1058_v58  ;;  %v1038_v23 = vld [vmem:[#allocation7 + $0x38] sm:$0xff] }
  0x70   : > { %349 = vmatpush1.msra.mxu0 %v290_v24  ;;  %1335 = vmatpush3.msra.mxu1 %v1042_v60  ;;  %v1053_v24 = vld [vmem:[#allocation7 + $0xb0] sm:$0xff] }
  0x71   : > { %350 = vmatprep.subr.mxu0 %v289_v25  ;;  %1336 = vmatprep.subr.mxu1 %v1057_v63  ;;  %v1033_v63 = vld [vmem:[#allocation7 + $0x10] sm:$0xff] }
  0x72   : > { %351 = vmatpush1.msra.mxu0 %v288_v26  ;;  %1337 = vmatpush3.msra.mxu1 %v1041_v1 }
  0x73   : > { %352 = vmatprep.subr.mxu0 %v287_v27  ;;  %1338 = vmatprep.subr.mxu1 %v1056_v5 }
  0x74   : > { %353 = vmatpush1.msra.mxu0 %v286_v28  ;;  %1339 = vmatpush3.msra.mxu1 %v1040_v7  ;;  %v1037_v28 = vld [vmem:[#allocation7 + $0x30] sm:$0xff]  ;;  %v1032_v7 = vld [vmem:[#allocation7 + $0x8] sm:$0xff] }
  0x75   : > { %354 = vmatprep.subr.mxu0 %v285_v29  ;;  %1340 = vmatprep.subr.mxu1 %v1055_v10 }
  0x76   : > { %355 = vmatpush1.msra.mxu0 %v284_v30  ;;  %1341 = vmatpush3.msra.mxu1 %v1039_v14  ;;  %v1047_v14 = vld [vmem:[#allocation7 + $0x80] sm:$0xff] }
  0x77   : > { %356 = vmatprep.subr.mxu0 %v283_v31  ;;  %1342 = vmatprep.subr.mxu1 %v1054_v17  ;;  %v1052_v31 = vld [vmem:[#allocation7 + $0xa8] sm:$0xff] }
  0x78   : > { %357 = vmatpush1.msra.mxu0 %v282_v32  ;;  %1343 = vmatpush3.msra.mxu1 %v1038_v23 }
  0x79   : > { %391 = vmatmul.mubr.f32.vlgmr.msra.gmra.mxu0 %v274_v33  ;;  %1344 = vmatprep.subr.mxu1 %v1053_v24 }
  0x7a   : > { %396 = vmatprep.mubr.f32.mxu0 %v1677_v0  ;;  %1345 = vmatpush3.msra.mxu1 %v1037_v28 }
  0x7b   : > { %1346 = vmatprep.subr.mxu1 %v1052_v31 }
  0x7d   : > { %397 = vmatmul.mubr.f32.gmra.mxu0 %v275_v34 }
  0x7e   : > { %402 = vmatprep.mubr.f32.mxu0 %v1677_v0 }
  0x81   : > { %403 = vmatmul.mubr.f32.gmra.mxu0 %v276_v35  ;;  %v1036_v35 = vld [vmem:[#allocation7 + $0x28] sm:$0xff] }
  0x82   : > { %408 = vmatprep.mubr.f32.mxu0 %v1677_v0  ;;  %1347 = vmatpush3.msra.mxu1 %v1036_v35 }
  0x83   : > { %1348 = vmatprep.subr.mxu1 %v1051_v41 }
  0x84   : > { %1349 = vmatpush3.msra.mxu1 %v1035_v42 }
  0x85   : > { %409 = vmatmul.mubr.f32.gmra.mxu0 %v277_v36  ;;  %1350 = vmatprep.subr.mxu1 %v1050_v45 }
  0x86   : > { %414 = vmatprep.mubr.f32.mxu0 %v1677_v0  ;;  %1351 = vmatpush3.msra.mxu1 %v1034_v48 }
  0x87   : > { %1352 = vmatprep.subr.mxu1 %v1049_v52 }
  0x88   : > { %1353 = vmatpush3.msra.mxu1 %v1033_v63 }
  0x89   : > { %415 = vmatmul.mubr.f32.gmra.mxu0 %v278_v37 }
  0x8a   : > { %420 = vmatprep.mubr.f32.mxu0 %v1677_v0 }
  0x8d   : > { %421 = vmatmul.mubr.f32.gmra.mxu0 %v279_v38 }
  0x8e   : > { %426 = vmatprep.mubr.f32.mxu0 %v1677_v0 }
  0x91   : > { %427 = vmatmul.mubr.f32.gmra.mxu0 %v280_v39 }
  0x92   : > { %432 = vmatprep.mubr.f32.mxu0 %v1677_v0 }
  0x95   : > { %433 = vmatmul.mubr.f32.gmra.mxu0 %v281_v40 }
 0x139   : > { %v392_v55 = vpop.f32.mrf.mxu0 }
 0x13a   : > { %v1884_v57 = vadd.f32 %v392_v55, %v1879_v50 }
 0x13b   : > { %v394_v59 = vpop.f32.mrf.mxu0 }
 0x13c   : > { %v1887_v61 = vmul.f32 0.70710677, %v1884_v57  ;;  %v1890_v62 = vadd.f32 %v394_v59, %v1881_v53  ;;  %v1963_v1 = vmul.f32 0.5, %v1884_v57 }
 0x13d   : > { %v398_v0 = vpop.f32.mrf.mxu0 }
 0x13e   : > { %v1893_v2 = vand.u32 2147483647, %v1887_v61  ;;  %v1896_v3 = vmul.f32 0.70710677, %v1890_v62  ;;  %v1899_v4 = vadd.f32 %v398_v0, %v1879_v50  ;;  %v1048_v0 = vld [vmem:[#allocation7 + $0x88] sm:$0xff]  ;;  %vm935_vm1 = vcmp.ge.f32.partialorder %v1887_v61, 0.0 }
 0x13f   : > { %v400_v6 = vpop.f32.mrf.mxu0  ;;  %1354 = vmatprep.subr.mxu1 %v1048_v0 }
 0x140   : > { %v487_v8 = vmul.f32 0.5, %v1893_v2  ;;  %v1903_v9 = vand.u32 2147483647, %v1896_v3  ;;  %v1906_v11 = vmul.f32 0.70710677, %v1899_v4  ;;  %v1909_v12 = vadd.f32 %v400_v6, %v1881_v53  ;;  %1355 = vmatpush3.msra.mxu1 %v1032_v7 }
 0x141   : > { %v404_v13 = vpop.f32.mrf.mxu0  ;;  %v839_v58 = vsub.f32 0.0, %v1893_v2  ;;  %1356 = vmatprep.subr.mxu1 %v1047_v14  ;;  %vm936_vm0 = vcmp.ge.f32.partialorder %v1896_v3, 0.0 }
 0x142   : > { %v503_v15 = vadd.f32 1.0, %v487_v8  ;;  %v488_v16 = vmul.f32 0.5, %v1903_v9  ;;  %v1913_v18 = vand.u32 2147483647, %v1906_v11  ;;  %v1916_v19 = vmul.f32 0.70710677, %v1909_v12 }
 0x143   : > { %v406_v20 = vpop.f32.mrf.mxu0  ;;  %v1919_v22 = vadd.f32 %v404_v13, %v1879_v50  ;;  %v840_v8 = vsub.f32 0.0, %v1903_v9  ;;  %v1987_v24 = vmul.f32 %v839_v58, %v1893_v2  ;;  %vm937_vm3 = vcmp.ge.f32.partialorder %v1906_v11, 0.0 }
 0x144   : > { %1456 = vrcp.f32 %v503_v15  ;;  %v504_v21 = vadd.f32 1.0, %v488_v16  ;;  %v489_v25 = vmul.f32 0.5, %v1913_v18  ;;  %v1923_v26 = vand.u32 2147483647, %v1916_v19 }
 0x145   : > { %v410_v27 = vpop.f32.mrf.mxu0  ;;  %v1926_v29 = vmul.f32 0.70710677, %v1919_v22  ;;  %v1929_v30 = vadd.f32 %v406_v20, %v1881_v53  ;;  %v1979_v15 = vmul.f32 0.5, %v1899_v4  ;;  %v1031_v20 = vld [vmem:[#allocation7] sm:$0xff]  ;;  %v841_v31 = vsub.f32 0.0, %v1913_v18 }
 0x146   : > { %1458 = vrcp.f32 %v504_v21  ;;  %v505_v32 = vadd.f32 1.0, %v489_v25  ;;  %v490_v33 = vmul.f32 0.5, %v1923_v26  ;;  %v1939_v39 = vadd.f32 %v410_v27, %v1879_v50  ;;  %1357 = vmatpush3.msra.mxu1 %v1031_v20 }
 0x147   : > { %v412_v34 = vpop.f32.mrf.mxu0  ;;  %v1933_v36 = vand.u32 2147483647, %v1926_v29  ;;  %v1936_v37 = vmul.f32 0.70710677, %v1929_v30  ;;  %v1983_v21 = vmul.f32 0.5, %v1890_v62  ;;  %v1990_v25 = vmul.f32 0.5, %v1909_v12 }
 0x148   : > { %1460 = vrcp.f32 %v505_v32  ;;  %v506_v38 = vadd.f32 1.0, %v490_v33  ;;  %v1946_v46 = vmul.f32 0.70710677, %v1939_v39  ;;  %v1949_v47 = vadd.f32 %v412_v34, %v1881_v53 }
 0x149   : > { %v416_v40 = vpop.f32.mrf.mxu0  ;;  %v491_v43 = vmul.f32 0.5, %v1933_v36  ;;  %v1943_v44 = vand.u32 2147483647, %v1936_v37  ;;  %v2003_v12 = vmul.f32 %v840_v8, %v1903_v9  ;;  %v842_v34 = vsub.f32 0.0, %v1923_v26 }
 0x14a   : > { %1462 = vrcp.f32 %v506_v38  ;;  %v1953_v54 = vand.u32 2147483647, %v1946_v46  ;;  %v1956_v55 = vmul.f32 0.70710677, %v1949_v47  ;;  %v1960_v60 = vadd.f32 %v416_v40, %v1879_v50 }
 0x14b   : > { %v507_v49 = vadd.f32 1.0, %v491_v43  ;;  %v492_v51 = vmul.f32 0.5, %v1943_v44  ;;  %v418_v56 = vpop.f32.mrf.mxu0  ;;  %v2017_v45 = vmul.f32 0.5, %v1919_v22  ;;  %v843_v9 = vsub.f32 0.0, %v1933_v36 }
 0x14c   : > { %v493_v5 = vmul.f32 0.5, %v1953_v54  ;;  %v1967_v6 = vand.u32 2147483647, %v1956_v55  ;;  %v1971_v10 = vmul.f32 0.70710677, %v1960_v60  ;;  %v1974_v13 = vadd.f32 %v418_v56, %v1881_v53 }
 0x14d   : > { %1464 = vrcp.f32 %v507_v49  ;;  %v508_v59 = vadd.f32 1.0, %v492_v51  ;;  %v422_v4 = vpop.f32.mrf.mxu0  ;;  %v2022_v49 = vmul.f32 %v841_v31, %v1913_v18  ;;  %v2025_v51 = vmul.f32 0.5, %v1929_v30 }
 0x14e   : > { %2499 = vst [vmem:[#allocation12_spill] sm:$0xff] %v1971_v10  ;;  %v509_v16 = vadd.f32 1.0, %v493_v5  ;;  %v494_v17 = vmul.f32 0.5, %v1967_v6  ;;  %v1993_v27 = vand.u32 2147483647, %v1971_v10  ;;  %v2011_v40 = vadd.f32 %v422_v4, %v1879_v50 }
 0x14f   : > { %1466 = vrcp.f32 %v508_v59  ;;  %v1999_v32 = vmul.f32 0.70710677, %v1974_v13  ;;  %v2032_v22 = vmul.f32 %v842_v34, %v1923_v26  ;;  %v2039_v5 = vmul.f32 0.5, %v1939_v39 }
 0x150   : > { %1468 = vrcp.f32 %v509_v16  ;;  %v510_v62 = vadd.f32 1.0, %v494_v17  ;;  %v495_v35 = vmul.f32 0.5, %v1993_v27  ;;  %2500 = vst [vmem:[#allocation13_spill] sm:$0xff] %v2011_v40  ;;  %v2035_v63 = vmul.f32 0.70710677, %v2011_v40 }
 0x151   : > { %v1976_v57 = vpop.eup %1456  ;;  %v2008_v38 = vand.u32 2147483647, %v1999_v32  ;;  %2502 = vst [vmem:[#allocation15_spill] sm:$0xff] %v2039_v5  ;;  %v2043_v14 = vmul.f32 %v843_v9, %v1933_v36  ;;  %vm938_vm2 = vcmp.ge.f32.partialorder %v1916_v19, 0.0  ;;  %vm940_vm4 = vcmp.ge.f32.partialorder %v1936_v37, 0.0 }
 0x152   : > { %v551_v23 = vmul.f32 0.17087276, %v1976_v57  ;;  %1470 = vrcp.f32 %v510_v62  ;;  %2501 = vst [vmem:[#allocation14_spill] sm:$0xff] %v2035_v63  ;;  %v511_v30 = vadd.f32 1.0, %v495_v35  ;;  %v2046_v16 = vand.u32 2147483647, %v2035_v63 }
 0x153   : > { %v1995_v28 = vpop.eup %1458  ;;  %v496_v52 = vmul.f32 0.5, %v2008_v38  ;;  %v2059_v35 = vmul.f32 0.5, %v1949_v47  ;;  %vm939_vm5 = vcmp.ge.f32.partialorder %v1926_v29, 0.0  ;;  %vm942_vm6 = vcmp.ge.f32.partialorder %v1956_v55, 0.0 }
 0x154   : > { %v567_v2 = vadd.f32 -0.82215226, %v551_v23  ;;  %v552_v33 = vmul.f32 0.17087276, %v1995_v28  ;;  %1472 = vrcp.f32 %v511_v30  ;;  %vm941_vm7 = vcmp.ge.f32.partialorder %v1946_v46, 0.0 }
 0x155   : > { %v2013_v41 = vpop.eup %1460  ;;  %v512_v4 = vadd.f32 1.0, %v496_v52  ;;  %2503 = vst [vmem:[#allocation16_spill] sm:$0xff] %v2059_v35  ;;  %vm944_vm8 = vcmp.ge.f32.partialorder %v1999_v32, 0.0 }
 0x156   : > { %v583_v42 = vmul.f32 %v1976_v57, %v567_v2  ;;  %v568_v43 = vadd.f32 -0.82215226, %v552_v33  ;;  %v553_v48 = vmul.f32 0.17087276, %v2013_v41  ;;  %v497_v2 = vmul.f32 0.5, %v2046_v16 }
 0x157   : > { %v2028_v56 = vpop.eup %1462  ;;  %1474 = vrcp.f32 %v512_v4 }
 0x158   : > { %v599_v58 = vadd.f32 1.4885159, %v583_v42  ;;  %v584_v59 = vmul.f32 %v1995_v28, %v568_v43  ;;  %v569_v0 = vadd.f32 -0.82215226, %v553_v48  ;;  %v554_v18 = vmul.f32 0.17087276, %v2028_v56 }
 0x15a   : > { %v615_v7 = vmul.f32 %v1976_v57, %v599_v58  ;;  %v600_v8 = vadd.f32 1.4885159, %v584_v59  ;;  %v2048_v26 = vpop.eup %1464  ;;  %v585_v17 = vmul.f32 %v2013_v41, %v569_v0  ;;  %v570_v20 = vadd.f32 -0.82215226, %v554_v18 }
 0x15b   : > { %v555_v62 = vmul.f32 0.17087276, %v2048_v26  ;;  %v513_v59 = vadd.f32 1.0, %v497_v2 }
 0x15c   : > { %v631_v39 = vadd.f32 -1.135204, %v615_v7  ;;  %v616_v31 = vmul.f32 %v1995_v28, %v600_v8  ;;  %v2055_v36 = vpop.eup %1466  ;;  %v601_v33 = vadd.f32 1.4885159, %v585_v17  ;;  %v586_v34 = vmul.f32 %v2028_v56, %v570_v20 }
 0x15d   : > { %v571_v9 = vadd.f32 -0.82215226, %v555_v62  ;;  %v556_v48 = vmul.f32 0.17087276, %v2055_v36  ;;  %v2064_v0 = vpop.eup %1468  ;;  %1476 = vrcp.f32 %v513_v59 }
 0x15e   : > { %v647_v42 = vmul.f32 %v1976_v57, %v631_v39  ;;  %v632_v43 = vadd.f32 -1.135204, %v616_v31  ;;  %v617_v52 = vmul.f32 %v2013_v41, %v601_v33  ;;  %v602_v58 = vadd.f32 1.4885159, %v586_v34 }
 0x15f   : > { %v587_v47 = vmul.f32 %v2048_v26, %v571_v9  ;;  %v572_v8 = vadd.f32 -0.82215226, %v556_v48  ;;  %v557_v20 = vmul.f32 0.17087276, %v2064_v0  ;;  %v2070_v39 = vpop.eup %1470 }
 0x160   : > { %v663_v18 = vadd.f32 0.27886808, %v647_v42  ;;  %v648_v7 = vmul.f32 %v1995_v28, %v632_v43  ;;  %v633_v30 = vadd.f32 -1.135204, %v617_v52  ;;  %v618_v17 = vmul.f32 %v2028_v56, %v602_v58 }
 0x161   : > { %v603_v62 = vadd.f32 1.4885159, %v587_v47  ;;  %v588_v2 = vmul.f32 %v2055_v36, %v572_v8  ;;  %v573_v42 = vadd.f32 -0.82215226, %v557_v20  ;;  %v558_v43 = vmul.f32 0.17087276, %v2070_v39 }
 0x162   : > { %v679_v31 = vmul.f32 %v1976_v57, %v663_v18  ;;  %v664_v4 = vadd.f32 0.27886808, %v648_v7  ;;  %v649_v33 = vmul.f32 %v2013_v41, %v633_v30  ;;  %v634_v34 = vadd.f32 -1.135204, %v618_v17 }
 0x163   : > { %v619_v52 = vmul.f32 %v2048_v26, %v603_v62  ;;  %v604_v58 = vadd.f32 1.4885159, %v588_v2  ;;  %v589_v18 = vmul.f32 %v2064_v0, %v573_v42  ;;  %v574_v7 = vadd.f32 -0.82215226, %v558_v43 }
 0x164   : > { %v695_v9 = vadd.f32 -0.18628806, %v679_v31  ;;  %v680_v48 = vmul.f32 %v1995_v28, %v664_v4  ;;  %v665_v59 = vadd.f32 0.27886808, %v649_v33  ;;  %v650_v23 = vmul.f32 %v2028_v56, %v634_v34 }
 0x165   : > { %v635_v30 = vadd.f32 -1.135204, %v619_v52  ;;  %v620_v17 = vmul.f32 %v2055_v36, %v604_v58  ;;  %v605_v40 = vadd.f32 1.4885159, %v589_v18  ;;  %v590_v4 = vmul.f32 %v2070_v39, %v574_v7  ;;  %v2088_v52 = vpop.eup %1472 }
 0x166   : > { %v711_v47 = vmul.f32 %v1976_v57, %v695_v9  ;;  %v696_v8 = vadd.f32 -0.18628806, %v680_v48  ;;  %v681_v20 = vmul.f32 %v2013_v41, %v665_v59  ;;  %v666_v31 = vadd.f32 0.27886808, %v650_v23 }
 0x167   : > { %v651_v33 = vmul.f32 %v2048_v26, %v635_v30  ;;  %v636_v34 = vadd.f32 -1.135204, %v620_v17  ;;  %v621_v9 = vmul.f32 %v2064_v0, %v605_v40  ;;  %v606_v48 = vadd.f32 1.4885159, %v590_v4  ;;  %v2094_v17 = vpop.eup %1474 }
 0x168   : > { %v727_v62 = vadd.f32 0.09678418, %v711_v47  ;;  %v712_v2 = vmul.f32 %v1995_v28, %v696_v8  ;;  %v697_v42 = vadd.f32 -0.18628806, %v681_v20  ;;  %v682_v43 = vmul.f32 %v2028_v56, %v666_v31 }
 0x169   : > { %v667_v59 = vadd.f32 0.27886808, %v651_v33  ;;  %v652_v18 = vmul.f32 %v2055_v36, %v636_v34  ;;  %v637_v8 = vadd.f32 -1.135204, %v621_v9  ;;  %v622_v30 = vmul.f32 %v2070_v39, %v606_v48 }
 0x16a   : > { %v743_v58 = vmul.f32 %v1976_v57, %v727_v62  ;;  %v728_v23 = vadd.f32 0.09678418, %v712_v2  ;;  %v713_v7 = vmul.f32 %v2013_v41, %v697_v42  ;;  %v698_v47 = vadd.f32 -0.18628806, %v682_v43  ;;  %v2100_v34 = vpop.eup %1476 }
 0x16b   : > { %v683_v31 = vmul.f32 %v2048_v26, %v667_v59  ;;  %v668_v4 = vadd.f32 0.27886808, %v652_v18  ;;  %v653_v2 = vmul.f32 %v2064_v0, %v637_v8  ;;  %v638_v33 = vadd.f32 -1.135204, %v622_v30 }
 0x16c   : > { %v759_v20 = vadd.f32 0.37409195, %v743_v58  ;;  %v744_v40 = vmul.f32 %v1995_v28, %v728_v23  ;;  %v729_v63 = vadd.f32 0.09678418, %v713_v7  ;;  %v714_v62 = vmul.f32 %v2028_v56, %v698_v47 }
 0x16d   : > { %v699_v9 = vadd.f32 -0.18628806, %v683_v31  ;;  %v684_v48 = vmul.f32 %v2055_v36, %v668_v4  ;;  %v669_v5 = vadd.f32 0.27886808, %v653_v2  ;;  %v654_v59 = vmul.f32 %v2070_v39, %v638_v33 }
 0x16e   : > { %v775_v42 = vmul.f32 %v1976_v57, %v759_v20  ;;  %v760_v43 = vadd.f32 0.37409195, %v744_v40  ;;  %v745_v58 = vmul.f32 %v2013_v41, %v729_v63  ;;  %v730_v23 = vadd.f32 0.09678418, %v714_v62 }
 0x16f   : > { %v715_v47 = vmul.f32 %v2048_v26, %v699_v9  ;;  %v700_v8 = vadd.f32 -0.18628806, %v684_v48  ;;  %v685_v20 = vmul.f32 %v2064_v0, %v669_v5  ;;  %v670_v40 = vadd.f32 0.27886808, %v654_v59 }
 0x170   : > { %v791_v18 = vadd.f32 1.0000237, %v775_v42  ;;  %v776_v7 = vmul.f32 %v1995_v28, %v760_v43  ;;  %v761_v30 = vadd.f32 0.37409195, %v745_v58  ;;  %v746_v35 = vmul.f32 %v2028_v56, %v730_v23 }
 0x171   : > { %v731_v63 = vadd.f32 0.09678418, %v715_v47  ;;  %v716_v62 = vmul.f32 %v2055_v36, %v700_v8  ;;  %v701_v42 = vadd.f32 -0.18628806, %v685_v20  ;;  %v686_v43 = vmul.f32 %v2070_v39, %v670_v40 }
 0x172   : > { %v807_v31 = vmul.f32 %v1976_v57, %v791_v18  ;;  %v792_v4 = vadd.f32 1.0000237, %v776_v7  ;;  %v777_v2 = vmul.f32 %v2013_v41, %v761_v30  ;;  %v762_v33 = vadd.f32 0.37409195, %v746_v35 }
 0x173   : > { %v747_v48 = vmul.f32 %v2048_v26, %v731_v63  ;;  %v732_v58 = vadd.f32 0.09678418, %v716_v62  ;;  %v2504_v5 = vsub.f32 0.0, %v1943_v44  ;;  %v717_v7 = vmul.f32 %v2064_v0, %v701_v42 }
 0x174   : > { %v808_v9 = vmul.f32 %v1995_v28, %v792_v4  ;;  %v793_v59 = vadd.f32 1.0000237, %v777_v2  ;;  %v778_v18 = vmul.f32 %v2028_v56, %v762_v33  ;;  %v702_v47 = vadd.f32 -0.18628806, %v686_v43 }
 0x175   : > { %v2119_v23 = vmul.f32 %v2504_v5, %v1943_v44  ;;  %v763_v35 = vadd.f32 0.37409195, %v747_v48  ;;  %v748_v8 = vmul.f32 %v2055_v36, %v732_v58  ;;  %v845_v30 = vsub.f32 0.0, %v1953_v54 }
 0x176   : > { %v846_v20 = vsub.f32 0.0, %v1967_v6  ;;  %v823_v40 = vadd.f32 -1.2655122, %v807_v31  ;;  %v733_v4 = vadd.f32 0.09678418, %v717_v7  ;;  %v718_v63 = vmul.f32 %v2070_v39, %v702_v47 }
 0x177   : > { %v847_v44 = vsub.f32 0.0, %v1993_v27  ;;  %v824_v62 = vadd.f32 -1.2655122, %v808_v9  ;;  %v809_v2 = vmul.f32 %v2013_v41, %v793_v59  ;;  %v779_v33 = vmul.f32 %v2048_v26, %v763_v35 }
 0x178   : > { %v764_v42 = vadd.f32 0.37409195, %v748_v8  ;;  %v794_v43 = vadd.f32 1.0000237, %v778_v18  ;;  %v749_v48 = vmul.f32 %v2064_v0, %v733_v4  ;;  %v734_v58 = vadd.f32 0.09678418, %v718_v63 }
 0x179   : > { %v2132_v5 = vmul.f32 0.5, %v1960_v60  ;;  %v795_v10 = vadd.f32 1.0000237, %v779_v33  ;;  %v2136_v7 = vmul.f32 %v845_v30, %v1953_v54  ;;  %v2139_v9 = vmul.f32 0.5, %v1974_v13  ;;  %v424_v30 = vpop.f32.mrf.mxu0 }
 0x17a   : > { %v780_v31 = vmul.f32 %v2055_v36, %v764_v42  ;;  %v765_v59 = vadd.f32 0.37409195, %v749_v48  ;;  %v750_v47 = vmul.f32 %v2070_v39, %v734_v58  ;;  %v2143_v18 = vmul.f32 %v846_v20, %v1967_v6 }
 0x17b   : > { %2505 = vst [vmem:[#allocation17_spill] sm:$0xff] %v2132_v5  ;;  %v2146_v35 = vmul.f32 %v847_v44, %v1993_v27  ;;  %v871_v60 = vadd.f32 %v1987_v24, %v823_v40  ;;  %v872_v8 = vadd.f32 %v2003_v12, %v824_v62  ;;  %v825_v4 = vadd.f32 -1.2655122, %v809_v2 }
 0x17c   : > { %v559_v54 = vmul.f32 0.17087276, %v2088_v52  ;;  %v810_v13 = vmul.f32 %v2028_v56, %v794_v43  ;;  %v796_v63 = vadd.f32 1.0000237, %v780_v31  ;;  %v781_v33 = vmul.f32 %v2064_v0, %v765_v59 }
 0x17d   : > { %v766_v42 = vadd.f32 0.37409195, %v750_v47  ;;  %v811_v6 = vmul.f32 %v2048_v26, %v795_v10  ;;  %v560_v27 = vmul.f32 0.17087276, %v2094_v17  ;;  %v848_v44 = vsub.f32 0.0, %v2008_v38 }
 0x17e   : > { %v575_v20 = vadd.f32 -0.82215226, %v559_v54  ;;  %v797_v24 = vadd.f32 1.0000237, %v781_v33  ;;  %v2159_v62 = vadd.f32 %v424_v30, %v1881_v53  ;;  %v887_v2 = vmul.f32 1.442695, %v871_v60  ;;  %v428_v54 = vpop.f32.mrf.mxu0 }
 0x17f   : > { %v782_v12 = vmul.f32 %v2070_v39, %v766_v42  ;;  %v873_v43 = vadd.f32 %v2022_v49, %v825_v4  ;;  %v576_v58 = vadd.f32 -0.82215226, %v560_v27  ;;  %v889_v10 = vmul.f32 1.442695, %v872_v8 }
 0x180   : > { %v591_v48 = vmul.f32 %v2088_v52, %v575_v20  ;;  %v826_v31 = vadd.f32 -1.2655122, %v810_v13  ;;  %v812_v59 = vmul.f32 %v2055_v36, %v796_v63  ;;  %v561_v47 = vmul.f32 0.17087276, %v2100_v34 }
 0x181   : > { %v827_v33 = vadd.f32 -1.2655122, %v811_v6  ;;  %v813_v42 = vmul.f32 %v2064_v0, %v797_v24  ;;  %v592_v30 = vmul.f32 %v2094_v17, %v576_v58  ;;  %v798_v5 = vadd.f32 1.0000237, %v782_v12  ;;  %v430_v12 = vpop.f32.mrf.mxu0 }
 0x182   : > { %v607_v40 = vadd.f32 1.4885159, %v591_v48  ;;  %v2168_v60 = vmul.f32 %v848_v44, %v2008_v38  ;;  %v577_v49 = vadd.f32 -0.82215226, %v561_v47  ;;  %v2171_v4 = vmul.f32 0.70710677, %v2159_v62 }
 0x183   : > { %1478 = vpow2.f32 %v887_v2  ;;  %v891_v8 = vmul.f32 1.442695, %v873_v43  ;;  %v608_v63 = vadd.f32 1.4885159, %v592_v30  ;;  %v874_v6 = vadd.f32 %v2032_v22, %v826_v31  ;;  %v434_v30 = vpop.f32.mrf.mxu0 }
 0x184   : > { %v623_v13 = vmul.f32 %v2088_v52, %v607_v40  ;;  %v828_v20 = vadd.f32 -1.2655122, %v812_v59  ;;  %v593_v27 = vmul.f32 %v2100_v34, %v577_v49  ;;  %v2177_v24 = vand.u32 2147483647, %v2171_v4 }
 0x185   : > { %v875_v38 = vadd.f32 %v2043_v14, %v827_v33  ;;  %v829_v44 = vadd.f32 -1.2655122, %v813_v42  ;;  %v624_v58 = vmul.f32 %v2094_v17, %v608_v63  ;;  %1480 = vpow2.f32 %v889_v10 }
 0x186   : > { %v639_v48 = vadd.f32 -1.135204, %v623_v13  ;;  %v814_v2 = vmul.f32 %v2070_v39, %v798_v5  ;;  %v609_v40 = vadd.f32 1.4885159, %v593_v27  ;;  %v498_v43 = vmul.f32 0.5, %v2177_v24 }
 0x187   : > { %1482 = vpow2.f32 %v891_v8  ;;  %v640_v31 = vadd.f32 -1.135204, %v624_v58  ;;  %v2185_v59 = vadd.f32 %v428_v54, %v1879_v50  ;;  %v893_v47 = vmul.f32 1.442695, %v874_v6 }
 0x188   : > { %v655_v22 = vmul.f32 %v2088_v52, %v639_v48  ;;  %v876_v14 = vadd.f32 %v2119_v23, %v828_v20  ;;  %v625_v33 = vmul.f32 %v2100_v34, %v609_v40  ;;  %v514_v42 = vadd.f32 1.0, %v498_v43 }
 0x189   : > { %v895_v10 = vmul.f32 1.442695, %v875_v38  ;;  %v877_v5 = vadd.f32 %v2136_v7, %v829_v44  ;;  %v656_v13 = vmul.f32 %v2094_v17, %v640_v31  ;;  %v830_v8 = vadd.f32 -1.2655122, %v814_v2 }
 0x18a   : > { %v671_v49 = vadd.f32 0.27886808, %v655_v22  ;;  %v641_v63 = vadd.f32 -1.135204, %v625_v33  ;;  %v2192_v27 = vmul.f32 0.70710677, %v2185_v59  ;;  %v2195_v54 = vadd.f32 %v430_v12, %v1881_v53 }
 0x18b   : > { %v672_v6 = vadd.f32 0.27886808, %v656_v13  ;;  %1484 = vrcp.f32 %v514_v42  ;;  %v2199_v20 = vadd.f32 %v434_v30, %v1879_v50  ;;  %v897_v7 = vmul.f32 1.442695, %v876_v14 }
 0x18c   : > { %2506 = vst [vmem:[#allocation18_spill] sm:$0xff] %v2195_v54  ;;  %v687_v23 = vmul.f32 %v2088_v52, %v671_v49  ;;  %1486 = vpow2.f32 %v893_v47  ;;  %v657_v38 = vmul.f32 %v2100_v34, %v641_v63  ;;  %v2203_v44 = vand.u32 2147483647, %v2192_v27 }
 0x18d   : > { %2507 = vst [vmem:[#allocation19_spill] sm:$0xff] %v2199_v20  ;;  %v899_v48 = vmul.f32 1.442695, %v877_v5  ;;  %v688_v2 = vmul.f32 %v2094_v17, %v672_v6  ;;  %v2207_v12 = vmul.f32 0.70710677, %v2195_v54  ;;  %1488 = vpow2.f32 %v895_v10 }
 0x18e   : > { %v703_v58 = vadd.f32 -0.18628806, %v687_v23  ;;  %v673_v40 = vadd.f32 0.27886808, %v657_v38  ;;  %v499_v43 = vmul.f32 0.5, %v2203_v44  ;;  %v878_v22 = vadd.f32 %v2143_v18, %v830_v8  ;;  %v436_v38 = vpop.f32.mrf.mxu0 }
 0x18f   : > { %v2211_v50 = vmul.f32 0.70710677, %v2199_v20  ;;  %v704_v47 = vadd.f32 -0.18628806, %v688_v2  ;;  %v2216_v14 = vand.u32 2147483647, %v2207_v12  ;;  %1490 = vpow2.f32 %v897_v7 }
 0x190   : > { %v719_v31 = vmul.f32 %v2088_v52, %v703_v58  ;;  %v1479_v33 = vpop.eup %1478  ;;  %v689_v42 = vmul.f32 %v2100_v34, %v673_v40  ;;  %v850_v30 = vsub.f32 0.0, %v2177_v24  ;;  %v515_v10 = vadd.f32 1.0, %v499_v43 }
 0x191   : > { %v2221_v5 = vand.u32 2147483647, %v2211_v50  ;;  %v720_v13 = vmul.f32 %v2094_v17, %v704_v47  ;;  %v500_v18 = vmul.f32 0.5, %v2216_v14  ;;  %v2508_v63 = vsub.f32 0.0, %v2046_v16 }
 0x192   : > { %v735_v49 = vadd.f32 0.09678418, %v719_v31  ;;  %v705_v8 = vadd.f32 -0.18628806, %v689_v42  ;;  %1492 = vrcp.f32 %v515_v10  ;;  %v1481_v58 = vpop.eup %1480  ;;  %v901_v31 = vmul.f32 1.442695, %v878_v22 }
 0x193   : > { %v2229_v23 = vmul.f32 %v2508_v63, %v2046_v16  ;;  %v501_v6 = vmul.f32 0.5, %v2221_v5  ;;  %1494 = vpow2.f32 %v899_v48  ;;  %v736_v2 = vadd.f32 0.09678418, %v720_v13 }
 0x194   : > { %v751_v7 = vmul.f32 %v2088_v52, %v735_v49  ;;  %v516_v40 = vadd.f32 1.0, %v500_v18  ;;  %v2234_v43 = vpop.eup %1482  ;;  %v721_v47 = vmul.f32 %v2100_v34, %v705_v8  ;;  %v2238_v16 = vmul.f32 %v850_v30, %v2177_v24 }
 0x195   : > { %v517_v42 = vadd.f32 1.0, %v501_v6  ;;  %v752_v63 = vmul.f32 %v2094_v17, %v736_v2  ;;  %v2242_v20 = vadd.f32 %v436_v38, %v1881_v53  ;;  %v920_v49 = vmul.f32 %v1481_v58, %v1995_v28 }
 0x196   : > { %v767_v10 = vadd.f32 0.37409195, %v751_v7  ;;  %1496 = vrcp.f32 %v516_v40  ;;  %v737_v48 = vadd.f32 0.09678418, %v721_v47  ;;  %v919_v13 = vmul.f32 %v1479_v33, %v1976_v57 }
 0x197   : > { %2509 = vst [vmem:[#allocation20_spill] sm:$0xff] %v2242_v20  ;;  %1498 = vrcp.f32 %v517_v42  ;;  %v768_v18 = vadd.f32 0.37409195, %v752_v63  ;;  %v851_v24 = vsub.f32 0.0, %v2203_v44  ;;  %v2249_v30 = vmul.f32 0.70710677, %v2242_v20 }
 0x198   : > { %v783_v22 = vmul.f32 %v2088_v52, %v767_v10  ;;  %v2251_v8 = vpop.eup %1484  ;;  %v753_v6 = vmul.f32 %v2100_v34, %v737_v48  ;;  %v952_v53 = vsub.f32 1.0, %v920_v49  ;;  %v1303_v38 = vadd.f32 -1.0, %v920_v49 }
 0x199   : > { %2510 = vst [vmem:[#allocation21_spill] sm:$0xff] %v2249_v30  ;;  %v951_v7 = vsub.f32 1.0, %v919_v13  ;;  %v1487_v2 = vpop.eup %1486  ;;  %v784_v28 = vmul.f32 %v2094_v17, %v768_v18  ;;  %v562_v57 = vmul.f32 0.17087276, %v2251_v8  ;;  %v2257_v33 = vand.u32 2147483647, %v2249_v30 }
 0x19a   : > { %v799_v40 = vadd.f32 1.0000237, %v783_v22  ;;  %1500 = vpow2.f32 %v901_v31  ;;  %v769_v58 = vadd.f32 0.37409195, %v753_v6  ;;  %v984_v47 = vsel %vm936_vm0, %v952_v53, %v1303_v38  ;;  %v2261_v10 = vpop.eup %1488 }
 0x19b   : > { %v1302_v42 = vadd.f32 -1.0, %v919_v13  ;;  %v800_v48 = vadd.f32 1.0000237, %v784_v28  ;;  %v578_v49 = vadd.f32 -0.82215226, %v562_v57  ;;  %v502_v22 = vmul.f32 0.5, %v2257_v33 }
 0x19c   : > { %v815_v63 = vmul.f32 %v2088_v52, %v799_v40  ;;  %v785_v18 = vmul.f32 %v2100_v34, %v769_v58  ;;  %v2268_v20 = vmul.f32 %v851_v24, %v2203_v44  ;;  %v1000_v31 = vadd.f32 1.0, %v984_v47  ;;  %v1491_v40 = vpop.eup %1490 }
 0x19d   : > { %v983_v3 = vsel %vm935_vm1, %v951_v7, %v1302_v42  ;;  %v816_v6 = vmul.f32 %v2094_v17, %v800_v48  ;;  %v594_v53 = vmul.f32 %v2251_v8, %v578_v49  ;;  %v518_v38 = vadd.f32 1.0, %v502_v22 }
 0x19e   : > { %v831_v13 = vadd.f32 -1.2655122, %v815_v63  ;;  %v801_v28 = vadd.f32 1.0000237, %v785_v18  ;;  %v852_v57 = vsub.f32 0.0, %v2216_v14  ;;  %v1016_v30 = vmul.f32 %v1000_v31, %v1983_v21 }
 0x19f   : > { %v999_v58 = vadd.f32 1.0, %v983_v3  ;;  %v2276_v54 = vpop.eup %1492  ;;  %v832_v24 = vadd.f32 -1.2655122, %v816_v6  ;;  %v610_v61 = vadd.f32 1.4885159, %v594_v53  ;;  %1502 = vrcp.f32 %v518_v38 }
 0x1a0   : > { %v879_v44 = vadd.f32 %v2146_v35, %v831_v13  ;;  %v2279_v7 = vpop.eup %1494  ;;  %v817_v47 = vmul.f32 %v2100_v34, %v801_v28  ;;  %v563_v42 = vmul.f32 0.17087276, %v2276_v54  ;;  %1134 = vmatprep.mubr.f32.mxu1 %v1016_v30  ;;  %v922_v48 = vmul.f32 %v1487_v2, %v2028_v56 }
 0x1a1   : > { %v1015_v63 = vmul.f32 %v999_v58, %v1963_v1  ;;  %v880_v49 = vadd.f32 %v2168_v60, %v832_v24  ;;  %v626_v35 = vmul.f32 %v2251_v8, %v610_v61  ;;  %v921_v22 = vmul.f32 %v2234_v43, %v2013_v41 }
 0x1a2   : > { %v903_v21 = vmul.f32 1.442695, %v879_v44  ;;  %v833_v31 = vadd.f32 -1.2655122, %v817_v47  ;;  %v579_v30 = vadd.f32 -0.82215226, %v563_v42  ;;  %v924_v47 = vmul.f32 %v1491_v40, %v2055_v36 }
 0x1a3   : > { %v2290_v18 = vpop.eup %1496  ;;  %1135 = vmatmul.mubr.f32.vlgmr.msra.gmra.mxu1 %v1015_v63  ;;  %v954_v1 = vsub.f32 1.0, %v922_v48  ;;  %v1305_v3 = vadd.f32 -1.0, %v922_v48  ;;  %v905_v2 = vmul.f32 1.442695, %v880_v49  ;;  %v642_v13 = vadd.f32 -1.135204, %v626_v35 }
 0x1a4   : > { %v2293_v56 = vpop.eup %1498  ;;  %1504 = vpow2.f32 %v903_v21  ;;  %v564_v60 = vmul.f32 0.17087276, %v2290_v18  ;;  %v881_v6 = vadd.f32 %v2229_v23, %v833_v31  ;;  %v595_v41 = vmul.f32 %v2276_v54, %v579_v30 }
 0x1a5   : > { %v565_v43 = vmul.f32 0.17087276, %v2293_v56  ;;  %v986_v53 = vsel %vm938_vm2, %v954_v1, %v1305_v3  ;;  %1506 = vpow2.f32 %v905_v2  ;;  %v658_v38 = vmul.f32 %v2251_v8, %v642_v13 }
 0x1a6   : > { %v580_v28 = vadd.f32 -0.82215226, %v564_v60  ;;  %v1002_v58 = vadd.f32 1.0, %v986_v53  ;;  %v907_v44 = vmul.f32 1.442695, %v881_v6  ;;  %v953_v19 = vsub.f32 1.0, %v921_v22 }
 0x1a7   : > { %v611_v24 = vadd.f32 1.4885159, %v595_v41  ;;  %v581_v61 = vadd.f32 -0.82215226, %v565_v43  ;;  %v1501_v42 = vpop.eup %1500  ;;  %v674_v23 = vadd.f32 0.27886808, %v658_v38 }
 0x1a8   : > { %v596_v63 = vmul.f32 %v2290_v18, %v580_v28  ;;  %v1018_v48 = vmul.f32 %v1002_v58, %v1990_v25  ;;  %1508 = vpow2.f32 %v907_v44  ;;  %v1304_v35 = vadd.f32 -1.0, %v921_v22 }
 0x1a9   : > { %v627_v21 = vmul.f32 %v2276_v54, %v611_v24  ;;  %v597_v49 = vmul.f32 %v2293_v56, %v581_v61  ;;  %v690_v31 = vmul.f32 %v2251_v8, %v674_v23  ;;  %v956_v36 = vsub.f32 1.0, %v924_v47 }
 0x1aa   : > { %v612_v30 = vadd.f32 1.4885159, %v596_v63  ;;  %1139 = vmatprep.mubr.f32.mxu1 %v1018_v48  ;;  %v1307_v40 = vadd.f32 -1.0, %v924_v47  ;;  %v985_v2 = vsel %vm937_vm3, %v953_v19, %v1304_v35  ;;  %v923_v25 = vmul.f32 %v2261_v10, %v2048_v26 }
 0x1ab   : > { %v643_v1 = vadd.f32 -1.135204, %v627_v21  ;;  %v613_v3 = vadd.f32 1.4885159, %v597_v49  ;;  %v706_v13 = vadd.f32 -0.18628806, %v690_v31  ;;  %v926_v48 = vmul.f32 %v1501_v42, %v2070_v39 }
 0x1ac   : > { %v628_v60 = vmul.f32 %v2290_v18, %v612_v30  ;;  %v1001_v22 = vadd.f32 1.0, %v985_v2  ;;  %v988_v6 = vsel %vm940_vm4, %v956_v36, %v1307_v40  ;;  %v2317_v41 = vpop.eup %1502  ;;  %v955_v38 = vsub.f32 1.0, %v923_v25 }
 0x1ad   : > { %v659_v43 = vmul.f32 %v2276_v54, %v643_v1  ;;  %v629_v53 = vmul.f32 %v2293_v56, %v613_v3  ;;  %v1004_v11 = vadd.f32 1.0, %v988_v6  ;;  %v722_v28 = vmul.f32 %v2251_v8, %v706_v13 }
 0x1ae   : > { %v644_v26 = vadd.f32 -1.135204, %v628_v60  ;;  %v566_v10 = vmul.f32 0.17087276, %v2317_v41  ;;  %v1017_v58 = vmul.f32 %v1001_v22, %v1979_v15  ;;  %v1306_v61 = vadd.f32 -1.0, %v923_v25 }
 0x1af   : > { %v675_v44 = vadd.f32 0.27886808, %v659_v43  ;;  %v645_v24 = vadd.f32 -1.135204, %v629_v53  ;;  %v1020_v37 = vmul.f32 %v1004_v11, %v2025_v51  ;;  %v738_v47 = vadd.f32 0.09678418, %v722_v28 }
 0x1b0   : > { %v660_v23 = vmul.f32 %v2290_v18, %v644_v26  ;;  %v582_v63 = vadd.f32 -0.82215226, %v566_v10  ;;  %1140 = vmatmul.mubr.f32.gmra.mxu1 %v1017_v58  ;;  %v987_v15 = vsel %vm939_vm5, %v955_v38, %v1306_v61  ;;  %v925_v51 = vmul.f32 %v2279_v7, %v2064_v0  ;;  %v2511_v58 = vld [vmem:[#allocation12_spill] sm:$0xff] }
 0x1b1   : > { %v1505_v19 = vpop.eup %1504  ;;  %v691_v21 = vmul.f32 %v2276_v54, %v675_v44  ;;  %v661_v49 = vmul.f32 %v2293_v56, %v645_v24  ;;  %1144 = vmatprep.mubr.f32.mxu1 %v1020_v37  ;;  %v754_v35 = vmul.f32 %v2251_v8, %v738_v47  ;;  %v1003_v36 = vadd.f32 1.0, %v987_v15  ;;  %v2512_v37 = vld [vmem:[#allocation16_spill] sm:$0xff] }
 0x1b2   : > { %v676_v31 = vadd.f32 0.27886808, %v660_v23  ;;  %v598_v30 = vmul.f32 %v2317_v41, %v582_v63  ;;  %v1507_v40 = vpop.eup %1506  ;;  %v958_v1 = vsub.f32 1.0, %v926_v48  ;;  %v1309_v3 = vadd.f32 -1.0, %v926_v48 }
 0x1b3   : > { %v707_v39 = vadd.f32 -0.18628806, %v691_v21  ;;  %v677_v42 = vadd.f32 0.27886808, %v661_v49  ;;  %v770_v2 = vadd.f32 0.37409195, %v754_v35  ;;  %v1019_v13 = vmul.f32 %v1003_v36, %v2017_v45 }
 0x1b4   : > { %v692_v29 = vmul.f32 %v2290_v18, %v676_v31  ;;  %v614_v25 = vadd.f32 1.4885159, %v598_v30  ;;  %v990_v60 = vsel %vm942_vm6, %v958_v1, %v1309_v3  ;;  %v957_v22 = vsub.f32 1.0, %v925_v51 }
 0x1b5   : > { %v723_v0 = vmul.f32 %v2276_v54, %v707_v39  ;;  %v693_v7 = vmul.f32 %v2293_v56, %v677_v42  ;;  %v1509_v6 = vpop.eup %1508  ;;  %v786_v43 = vmul.f32 %v2251_v8, %v770_v2  ;;  %1145 = vmatmul.mubr.f32.gmra.mxu1 %v1019_v13  ;;  %v1006_v38 = vadd.f32 1.0, %v990_v60  ;;  %v2513_v42 = vld [vmem:[#allocation15_spill] sm:$0xff] }
 0x1b6   : > { %v708_v53 = vadd.f32 -0.18628806, %v692_v29  ;;  %v630_v11 = vmul.f32 %v2317_v41, %v614_v25  ;;  %v1308_v10 = vadd.f32 -1.0, %v925_v51  ;;  %v928_v45 = vmul.f32 %v1507_v40, %v2094_v17 }
 0x1b7   : > { %v739_v28 = vadd.f32 0.09678418, %v723_v0  ;;  %v709_v26 = vadd.f32 -0.18628806, %v693_v7  ;;  %vm943_vm9 = vcmp.ge.f32.partialorder %v2511_v58, 0.0  ;;  %v1022_v61 = vmul.f32 %v1006_v38, %v2512_v37 }
 0x1b8   : > { %v802_v44 = vadd.f32 1.0000237, %v786_v43  ;;  %v724_v55 = vmul.f32 %v2290_v18, %v708_v53  ;;  %v646_v24 = vadd.f32 -1.135204, %v630_v11  ;;  %v989_v63 = vsel %vm941_vm7, %v957_v22, %v1308_v10 }
 0x1b9   : > { %v755_v47 = vmul.f32 %v2276_v54, %v739_v28  ;;  %v725_v23 = vmul.f32 %v2293_v56, %v709_v26  ;;  %v960_v48 = vsub.f32 1.0, %v928_v45  ;;  %1149 = vmatprep.mubr.f32.mxu1 %v1022_v61  ;;  %v1005_v15 = vadd.f32 1.0, %v989_v63 }
 0x1ba   : > { %v818_v21 = vmul.f32 %v2251_v8, %v802_v44  ;;  %v740_v49 = vadd.f32 0.09678418, %v724_v55  ;;  %v662_v17 = vmul.f32 %v2317_v41, %v646_v24  ;;  %v1311_v31 = vadd.f32 -1.0, %v928_v45 }
 0x1bb   : > { %v771_v51 = vadd.f32 0.37409195, %v755_v47  ;;  %v741_v35 = vadd.f32 0.09678418, %v725_v23  ;;  %v927_v30 = vmul.f32 %v1505_v19, %v2088_v52  ;;  %v1021_v46 = vmul.f32 %v1005_v15, %v2513_v42  ;;  %v2515_v47 = vld [vmem:[#allocation17_spill] sm:$0xff] }
 0x1bc   : > { %v834_v36 = vadd.f32 -1.2655122, %v818_v21  ;;  %v756_v40 = vmul.f32 %v2290_v18, %v740_v49  ;;  %v678_v39 = vadd.f32 0.27886808, %v662_v17  ;;  %v992_v2 = vsel %vm944_vm8, %v960_v48, %v1311_v31  ;;  %v2516_v23 = vld [vmem:[#allocation13_spill] sm:$0xff] }
 0x1bd   : > { %v787_v1 = vmul.f32 %v2276_v54, %v771_v51  ;;  %v757_v3 = vmul.f32 %v2293_v56, %v741_v35  ;;  %v959_v29 = vsub.f32 1.0, %v927_v30  ;;  %1150 = vmatmul.mubr.f32.gmra.mxu1 %v1021_v46  ;;  %v1008_v52 = vadd.f32 1.0, %v992_v2 }
 0x1be   : > { %v882_v25 = vadd.f32 %v2238_v16, %v834_v36  ;;  %v772_v13 = vadd.f32 0.37409195, %v756_v40  ;;  %v694_v0 = vmul.f32 %v2317_v41, %v678_v39  ;;  %v1310_v60 = vadd.f32 -1.0, %v927_v30 }
 0x1bf   : > { %v803_v19 = vadd.f32 1.0000237, %v787_v1  ;;  %v773_v7 = vadd.f32 0.37409195, %v757_v3  ;;  %v929_v22 = vmul.f32 %v1509_v6, %v2100_v34  ;;  %v1024_v32 = vmul.f32 %v1008_v52, %v2139_v9  ;;  %v2514_v9 = vld [vmem:[#allocation14_spill] sm:$0xff] }
 0x1c0   : > { %v909_v43 = vmul.f32 1.442695, %v882_v25  ;;  %v788_v53 = vmul.f32 %v2290_v18, %v772_v13  ;;  %v710_v11 = vadd.f32 -0.18628806, %v694_v0  ;;  %v991_v28 = vsel %vm943_vm9, %v959_v29, %v1310_v60 }
 0x1c1   : > { %v819_v38 = vmul.f32 %v2276_v54, %v803_v19  ;;  %v789_v16 = vmul.f32 %v2293_v56, %v773_v7  ;;  %v961_v26 = vsub.f32 1.0, %v929_v22  ;;  %1154 = vmatprep.mubr.f32.mxu1 %v1024_v32  ;;  %v1007_v34 = vadd.f32 1.0, %v991_v28 }
 0x1c2   : > { %1510 = vpow2.f32 %v909_v43  ;;  %v804_v10 = vadd.f32 1.0000237, %v788_v53  ;;  %v726_v45 = vmul.f32 %v2317_v41, %v710_v11  ;;  %v853_v55 = vsub.f32 0.0, %v2221_v5 }
 0x1c3   : > { %v835_v6 = vadd.f32 -1.2655122, %v819_v38  ;;  %v805_v44 = vadd.f32 1.0000237, %v789_v16  ;;  %v1312_v24 = vadd.f32 -1.0, %v929_v22  ;;  %vm945_vm10 = vcmp.ge.f32.partialorder %v2514_v9, 0.0 }
 0x1c4   : > { %v820_v37 = vmul.f32 %v2290_v18, %v804_v10  ;;  %v742_v61 = vadd.f32 0.09678418, %v726_v45  ;;  %v1023_v58 = vmul.f32 %v1007_v34, %v2515_v47  ;;  %v449_v63 = vmul.f32 0.5, %v2516_v23 }
 0x1c5   : > { %v883_v48 = vadd.f32 %v2268_v20, %v835_v6  ;;  %v821_v21 = vmul.f32 %v2293_v56, %v805_v44  ;;  %v993_v49 = vsel %vm945_vm10, %v961_v26, %v1312_v24  ;;  %v868_v15 = vmul.f32 %v852_v57, %v2216_v14 }
 0x1c6   : > { %v836_v17 = vadd.f32 -1.2655122, %v820_v37  ;;  %v758_v51 = vmul.f32 %v2317_v41, %v742_v61  ;;  %1155 = vmatmul.mubr.f32.gmra.mxu1 %v1023_v58  ;;  %v1009_v35 = vadd.f32 1.0, %v993_v49  ;;  %v869_v36 = vmul.f32 %v853_v55, %v2221_v5  ;;  %v2518_v37 = vld [vmem:[#allocation19_spill] sm:$0xff] }
 0x1c7   : > { %v911_v31 = vmul.f32 1.442695, %v883_v48  ;;  %v837_v30 = vadd.f32 -1.2655122, %v821_v21  ;;  %v854_v14 = vsub.f32 0.0, %v2257_v33  ;;  %vm946_vm11 = vcmp.ge.f32.partialorder %v2171_v4, 0.0 }
 0x1c8   : > { %v884_v40 = vadd.f32 %v868_v15, %v836_v17  ;;  %v774_v39 = vadd.f32 0.37409195, %v758_v51  ;;  %v1025_v42 = vmul.f32 %v1009_v35, %v449_v63  ;;  %v450_v22 = vmul.f32 0.5, %v2159_v62  ;;  %v2520_v21 = vld [vmem:[#allocation20_spill] sm:$0xff] }
 0x1c9   : > { %1512 = vpow2.f32 %v911_v31  ;;  %v885_v20 = vadd.f32 %v869_v36, %v837_v30  ;;  %v870_v5 = vmul.f32 %v854_v14, %v2257_v33  ;;  %vm947_vm12 = vcmp.ge.f32.partialorder %v2192_v27, 0.0  ;;  %v2517_v27 = vld [vmem:[#allocation18_spill] sm:$0xff]  ;;  %v1318_v35 = vld [vmem:[%s2472_s4] ss:$0 sm:$0xff] }
 0x1ca   : > { %v913_v46 = vmul.f32 1.442695, %v884_v40  ;;  %v790_v1 = vmul.f32 %v2317_v41, %v774_v39  ;;  %v451_v62 = vmul.f32 0.5, %v2185_v59  ;;  %vm948_vm13 = vcmp.ge.f32.partialorder %v2207_v12, 0.0 }
 0x1cb   : > { %v915_v3 = vmul.f32 1.442695, %v885_v20  ;;  %vm949_vm14 = vcmp.ge.f32.partialorder %v2211_v50, 0.0  ;;  %v452_v24 = vmul.f32 0.5, %v2517_v27  ;;  %v453_v61 = vmul.f32 0.5, %v2518_v37  ;;  %v2519_v50 = vld [vmem:[#allocation21_spill] sm:$0xff] }
 0x1cc   : > { %1514 = vpow2.f32 %v913_v46  ;;  %v806_v2 = vadd.f32 1.0000237, %v790_v1  ;;  %vm950_vm15 = vcmp.ge.f32.partialorder %v2519_v50, 0.0  ;;  %v454_v49 = vmul.f32 0.5, %v2520_v21 }
 0x1cd   : > { %1516 = vpow2.f32 %v915_v3 }
 0x1ce   : > { %v822_v57 = vmul.f32 %v2317_v41, %v806_v2 }
 0x1cf   : > { %v1511_v29 = vpop.eup %1510 }
 0x1d0   : > { %v838_v25 = vadd.f32 -1.2655122, %v822_v57  ;;  %v930_v13 = vmul.f32 %v1511_v29, %v2251_v8 }
 0x1d2   : > { %v886_v0 = vadd.f32 %v870_v5, %v838_v25  ;;  %v962_v52 = vsub.f32 1.0, %v930_v13  ;;  %v1313_v19 = vadd.f32 -1.0, %v930_v13 }
 0x1d4   : > { %v917_v7 = vmul.f32 1.442695, %v886_v0  ;;  %v994_v60 = vsel %vm946_vm11, %v962_v52, %v1313_v19 }
 0x1d5   : > { %v1010_v43 = vadd.f32 1.0, %v994_v60 }
 0x1d6   : > { %v1513_v53 = vpop.eup %1512  ;;  %1518 = vpow2.f32 %v917_v7 }
 0x1d7   : > { %v1026_v11 = vmul.f32 %v1010_v43, %v450_v22  ;;  %v931_v32 = vmul.f32 %v1513_v53, %v2276_v54 }
 0x1d9   : > { %v1515_v38 = vpop.eup %1514  ;;  %1159 = vmatprep.mubr.f32.mxu1 %v1026_v11  ;;  %v963_v33 = vsub.f32 1.0, %v931_v32  ;;  %v1314_v16 = vadd.f32 -1.0, %v931_v32 }
 0x1da   : > { %v1517_v8 = vpop.eup %1516  ;;  %1160 = vmatmul.mubr.f32.gmra.mxu1 %v1025_v42  ;;  %v932_v4 = vmul.f32 %v1515_v38, %v2290_v18 }
 0x1db   : > { %v995_v28 = vsel %vm947_vm12, %v963_v33, %v1314_v16  ;;  %v933_v26 = vmul.f32 %v1517_v8, %v2293_v56 }
 0x1dc   : > { %v964_v10 = vsub.f32 1.0, %v932_v4  ;;  %v1315_v45 = vadd.f32 -1.0, %v932_v4  ;;  %v1011_v34 = vadd.f32 1.0, %v995_v28 }
 0x1dd   : > { %v965_v54 = vsub.f32 1.0, %v933_v26  ;;  %v1316_v6 = vadd.f32 -1.0, %v933_v26 }
 0x1de   : > { %v996_v44 = vsel %vm948_vm13, %v964_v10, %v1315_v45  ;;  %v1027_v55 = vmul.f32 %v1011_v34, %v451_v62 }
 0x1df   : > { %v1012_v9 = vadd.f32 1.0, %v996_v44  ;;  %v997_v18 = vsel %vm949_vm14, %v965_v54, %v1316_v6 }
 0x1e0   : > { %v1013_v56 = vadd.f32 1.0, %v997_v18 }
 0x1e1   : > { %v1028_v47 = vmul.f32 %v1012_v9, %v452_v24 }
 0x1e2   : > { %v1029_v59 = vmul.f32 %v1013_v56, %v453_v61 }
 0x1e3   : > { %v1519_v58 = vpop.eup %1518  ;;  %1164 = vmatprep.mubr.f32.mxu1 %v1028_v47 }
 0x1e4   : > { %1165 = vmatmul.mubr.f32.gmra.mxu1 %v1027_v55  ;;  %v934_v12 = vmul.f32 %v1519_v58, %v2317_v41 }
 0x1e6   : > { %v966_v23 = vsub.f32 1.0, %v934_v12  ;;  %v1317_v63 = vadd.f32 -1.0, %v934_v12 }
 0x1e8   : > { %v998_v48 = vsel %vm950_vm15, %v966_v23, %v1317_v63 }
 0x1e9   : > { %v1014_v17 = vadd.f32 1.0, %v998_v48 }
 0x1eb   : > { %v1030_v15 = vmul.f32 %v1014_v17, %v454_v49 }
 0x1ed   : > { %1169 = vmatprep.mubr.f32.mxu1 %v1030_v15 }
 0x1ee   : > { %1170 = vmatmul.mubr.f32.gmra.mxu1 %v1029_v59 }
 0x263   : > { %v1358_v51 = vpop.f32.mrf.mxu1 }
 0x265   : > { %v1359_v31 = vpop.f32.mrf.mxu1 }
 0x266   : > { %v1360_v30 = vadd.f32 %v1359_v31, %v1358_v51 }
 0x268   : > { %v1137_v36 = vadd.f32 %v1360_v30, %v1318_v35 }
 0x26a   : > { %1175 = vst [vmem:[%s2408_s12] sm:$0xff] %v1137_v36 }
 0x270   : > { %v1361_v41 = vpop.f32.mrf.mxu1 }
 0x272   : > { %v1362_v40 = vpop.f32.mrf.mxu1 }
 0x273   : > { %v1363_v39 = vadd.f32 %v1362_v40, %v1361_v41 }
 0x275   : > { %v1142_v42 = vadd.f32 %v1363_v39, %v1318_v35  ;;  %v1364_v20 = vpop.f32.mrf.mxu1 }
 0x277   : > { %1176 = vst [vmem:[%s2408_s12 + $0x8] sm:$0xff] %v1142_v42  ;;  %v1365_v46 = vpop.f32.mrf.mxu1 }
 0x278   : > { %v1366_v1 = vadd.f32 %v1365_v46, %v1364_v20 }
 0x27a   : > { %v1147_v3 = vadd.f32 %v1366_v1, %v1318_v35 }
 0x27c   : > { %1177 = vst [vmem:[%s2408_s12 + $0x10] sm:$0xff] %v1147_v3 }
 0x27d   : > { %v1367_v2 = vpop.f32.mrf.mxu1 }
 0x27f   : > { %v1368_v14 = vpop.f32.mrf.mxu1 }
 0x280   : > { %v1369_v57 = vadd.f32 %v1368_v14, %v1367_v2 }
 0x282   : > { %v1152_v29 = vadd.f32 %v1369_v57, %v1318_v35 }
 0x284   : > { %1178 = vst [vmem:[%s2408_s12 + $0x18] sm:$0xff] %v1152_v29 }
 0x286   : > { %v1370_v25 = vpop.f32.mrf.mxu1 }
 0x288   : > { %v1371_v5 = vpop.f32.mrf.mxu1 }
 0x289   : > { %v1372_v13 = vadd.f32 %v1371_v5, %v1370_v25 }
 0x28b   : > { %v1157_v0 = vadd.f32 %v1372_v13, %v1318_v35 }
 0x28d   : > { %1179 = vst [vmem:[%s2408_s12 + $0x20] sm:$0xff] %v1157_v0 }
 0x29a   : > { %v1373_v52 = vpop.f32.mrf.mxu1 }
 0x29c   : > { %v1374_v19 = vpop.f32.mrf.mxu1 }
 0x29d   : > { %v1375_v7 = vadd.f32 %v1374_v19, %v1373_v52 }
 0x29f   : > { %v1162_v60 = vadd.f32 %v1375_v7, %v1318_v35 }
 0x2a1   : > { %1180 = vst [vmem:[%s2408_s12 + $0x28] sm:$0xff] %v1162_v60 }
 0x2a4   : > { %v1376_v22 = vpop.f32.mrf.mxu1 }
 0x2a6   : > { %v1377_v43 = vpop.f32.mrf.mxu1 }
 0x2a7   : > { %v1378_v53 = vadd.f32 %v1377_v43, %v1376_v22 }
 0x2a9   : > { %v1167_v11 = vadd.f32 %v1378_v53, %v1318_v35 }
 0x2ab   : > { %1181 = vst [vmem:[%s2408_s12 + $0x30] sm:$0xff] %v1167_v11 }
 0x2ae   : > { %v1379_v32 = vpop.f32.mrf.mxu1 }
 0x2b0   : > { %v1380_v38 = vpop.f32.mrf.mxu1 }
 0x2b1   : > { %v1381_v33 = vadd.f32 %v1380_v38, %v1379_v32 }
 0x2b3   : > { %v1172_v16 = vadd.f32 %v1381_v33, %v1318_v35 }
 0x2b5   : > { %1182 = vst [vmem:[%s2408_s12 + $0x38] sm:$0xff] %v1172_v16 }
 0x2b6   : > { %1613 = shalt.err (!%p1610_p9)
}
 0x2b7   : > { %s1614_s15 = scalar_lea.hbm %s2424_s11, 1024  ;;  %s1618_s14 = scalar_lea.hbm %s2473_s5, 2048 }
 0x2b8   : > { %p1615_p13 = scmp.ne.s32.totalorder %s2424_s11, %s1614_s15  ;;  %p1619_p4 = scmp.lt.s32.totalorder %s2424_s11, %s2473_s5 }
 0x2b9   : > { %p1620_p8 = scmp.lt.s32.totalorder %s1618_s14, %s1614_s15 }
 0x2ba   : > { %p1616_p5 = pnand %p1615_p13, %p2521_p10 }
 0x2bb   : > { %p1621_p7 = por %p1620_p8, %p1619_p4 }
 0x2bc   : > { %p1617_p0 = pneg %p1616_p5 }
 0x2be   : > { %p1622_p11 = pnand %p1621_p7, %p1617_p0 }
 0x2c0   : > { %1625 = shalt.err (!%p1622_p11)
}
 0x2c1   : > { %s1679_s8 = smov 128   ;;  %s1680_s9 = smov 8  }
 0x2c2   : > { %1392 = dma.vmem_to_hbm [thread:$0]  (%p2521_p10), %s2419_s16, 1024, %s2424_s11, %s1184_s27, %s1679_s8, %s1679_s8, %s1680_s9  }
 0x2c3 PF: > { %s1212_s30 = sand.u32 1, %s1656_s18   ;;  %p2522_p1 = scmp.ne.s32.totalorder %s2488_s25, 0 }
 0x2c4   : > { %p2523_p2 = scmp.ge.s32.totalorder %s1668_s21, 2  ;;  %s1213_s23 = scalar_lea.sflag [#allocation4], %s1212_s30 }
 0x2c6   : > { %p1406_p6 = pnand %p2523_p2, %p2522_p1 }
 0x2c8   : > { %p1407_p12 = pneg %p1406_p6 }
 0x2ca   : > { %1651 = dma.done.wait (%p1407_p12), %s1213_s23, 1024  }
 0x2cb   : > { %1653 = vsyncadd (%p1407_p12), %s1213_s23, 4294966272  ;;  %p19_p3 = scmp.ge.s32.totalorder %s1786_s17, 4   ;;  %s2524_s18 = smov %s1660_s19 }
 0x2cc   : > { %s2525_s19 = smov %s1664_s20  ;;  %s2526_s20 = smov %s1795_s28 }
 0x2cd   : > { %s2527_s21 = smov %s1786_s17  ;;  %21 = sbr.rel (!%p19_p3) target bundleno = 6 (0x6), region = 93 }
 0x2d2   :  { %1218 = vsyncpa [#allocation3], 1 }
 0x2d3   :  { %1220 = vsyncpa [#allocation3 + $0x1], 1 }
 0x2d4   :  { %1221 = vsyncpa [#allocation6], 1 }
 0x2d5   :  { %1222 = vsyncpa [#allocation4], 1 }
 0x2d6   :  { %1224 = vsyncpa [#allocation4 + $0x1], 1 }

</bundles_post_ra>
